<compile_context>
chip_gen: v7x
topology: tpu7x:2x2x1
jax: 0.10.0
libtpu: 0.0.40
codegen_flags: <defaults>
</compile_context>

<pallas_src>
import jax
import jax.numpy as jnp
import numpy as np
from jax.experimental import pallas as pl
from jax.experimental.pallas import tpu as pltpu

BN_EPS = 1e-5          # nn.BatchNorm2d default
LRELU_SLOPE = 0.2      # nn.LeakyReLU(negative_slope=0.2)


# ---------------------------------------------------------------------------
# Fused kernel: the whole Discriminator forward in one invocation (gridless)
# ---------------------------------------------------------------------------
def _discriminator_kernel(xp_ref, rs1_ref, cw1_ref, p1_ref, ab1_ref,
                          rs2_ref, cw2_ref, p2_ref, ab2_ref, wh_ref, bh_ref,
                          o_ref):
    """Layouts (per batch element b):
         xp_ref[b] : (30, Cin*30)   padded input, sublane=row, lane=(cin, col)
         block-1   : (14, C1*16)    lane=(c1, 1+ow); lanes 0/15 of every 16-lane
                                    channel group hold conv2's zero padding cols
         block-2   : (7,  C2*7)     lane=(c2, ow)
       Conv = sum_kh (RowSel_kh @ X_b) @ G_kh   (constant matrices from the
       wrapper).  All intermediates stay as SSA values in VMEM/vregs."""
    B = xp_ref.shape[0]
    f32 = jnp.float32

    def mm(a, b):
        return jnp.dot(a, b, preferred_element_type=f32)

    def conv(xb, rs_ref, cw_ref):
        acc = mm(mm(rs_ref[0], xb), cw_ref[0])
        for kh in range(1, 4):
            acc = acc + mm(mm(rs_ref[kh], xb), cw_ref[kh])
        return acc

    def bn_coeffs(zs, p_ref, ab_ref, count):
        # Single-pass batch stats (biased var).  p_ref broadcasts the per-
        # channel sums back onto every lane of that channel (zeros on pad
        # lanes, so padding columns stay exactly zero).
        s = q = None
        for z in zs:
            zsum = jnp.sum(z, axis=0, keepdims=True)
            qsum = jnp.sum(z * z, axis=0, keepdims=True)
            s = zsum if s is None else s + zsum
            q = qsum if q is None else q + qsum
        inv_n = 1.0 / count
        mean = mm(s, p_ref[...]) * inv_n
        ex2 = mm(q, p_ref[...]) * inv_n
        var = ex2 - mean * mean
        ab = ab_ref[...]
        scale = ab[0:1, :] * jax.lax.rsqrt(var + BN_EPS)   # gamma / std
        shift = ab[1:2, :] - scale * mean                  # beta - gamma*mean/std
        return scale, shift

    def lrelu(y):
        return jnp.where(y >= 0, y, LRELU_SLOPE * y)

    # ---- Block 1: Conv(k4, s2, p1) over the whole batch ---------------------
    z1 = [conv(xp_ref[b], rs1_ref, cw1_ref) for b in range(B)]     # (14, C1*16)
    scale1, shift1 = bn_coeffs(z1, p1_ref, ab1_ref, float(B * 14 * 14))

    # ---- BN1 + LeakyReLU, add the zero rows conv2's padding=1 needs ---------
    zrow = jnp.zeros((1, z1[0].shape[1]), f32)
    x2 = [jnp.concatenate([zrow, lrelu(z * scale1 + shift1), zrow], axis=0)
          for z in z1]                                              # (16, C1*16)

    # ---- Block 2: Conv(k4, s2, p1) -------------------------------------------
    z2 = [conv(xb, rs2_ref, cw2_ref) for xb in x2]                  # (7, C2*7)
    scale2, shift2 = bn_coeffs(z2, p2_ref, ab2_ref, float(B * 7 * 7))

    # ---- BN2 + LeakyReLU + folded head (Conv k7 o Linear) + Sigmoid ----------
    wh = wh_ref[...]
    logits = []
    for z in z2:
        y = lrelu(z * scale2 + shift2) * wh
        logits.append(jnp.sum(jnp.sum(y, axis=1, keepdims=True),
                              axis=0, keepdims=True))               # (1, 1)
    logit = jnp.concatenate(logits, axis=0)                         # (B, 1)
    o_ref[...] = jax.nn.sigmoid(logit + bh_ref[...])


# ---------------------------------------------------------------------------
# Forward pass wrapper: one pallas_call, full-array VMEM blocks (all tiny)
# ---------------------------------------------------------------------------
def discriminator_forward(x, kp):
    """x: [B, Cin, 28, 28] (NCHW) -> [B, 1] probabilities."""
    B, Cin, H, W = x.shape
    assert (H, W) == (28, 28), "Discriminator head (k=7 valid) implies 28x28 input"
    xp = jnp.pad(x, ((0, 0), (0, 0), (1, 1), (1, 1)))                   # (B,Cin,30,30)
    xp = jnp.transpose(xp, (0, 2, 1, 3)).reshape(B, 30, Cin * 30)       # (B,30,Cin*30)
    vmem = pl.BlockSpec(memory_space=pltpu.MemorySpace.VMEM)
    return pl.pallas_call(
        _discriminator_kernel,
        out_shape=jax.ShapeDtypeStruct((B, 1), jnp.float32),
        in_specs=[vmem] * 11,
        out_specs=vmem,
    )(xp, kp["rs1"], kp["cw1"], kp["p1"], kp["ab1"],
      kp["rs2"], kp["cw2"], kp["p2"], kp["ab2"], kp["wh"], kp["bh"])


# ---------------------------------------------------------------------------
# One-time parameter preprocessing (constants consumed by the kernel)
# ---------------------------------------------------------------------------
def _row_select(n_out, n_in):
    """rs[kh, oh, hp] = 1 iff hp == 2*oh + kh  (stride-2 row picker, per kh)."""
    rs = np.zeros((4, n_out, n_in), np.float32)
    for kh in range(4):
        for oh in range(n_out):
            rs[kh, oh, 2 * oh + kh] = 1.0
    return jnp.asarray(rs)


def _col_select(n_out, n_in):
    """cs[kw, wp, ow] = 1 iff wp == 2*ow + kw."""
    cs = np.zeros((4, n_in, n_out), np.float32)
    for kw in range(4):
        for ow in range(n_out):
            cs[kw, 2 * ow + kw, ow] = 1.0
    return jnp.asarray(cs)


def _channel_projector(n_ch, group, pad):
    """P[l, l'] = 1 iff lanes l, l' belong to the same channel's real columns."""
    width = group + 2 * pad
    m = np.zeros((n_ch, n_ch * width), np.float32)
    for c in range(n_ch):
        m[c, c * width + pad: c * width + pad + group] = 1.0
    return jnp.asarray(m.T @ m)


def prepare_kernel_params(p):
    """Fold conv weights + column selection (+ conv2's padding columns) into the
    per-kernel-row matmul constants, BN affine into per-lane vectors, and the
    7x7 head conv + Linear into one (7, C2*7) weight map (exact folds)."""
    w1, w2, w3 = p["w1"], p["w2"], p["w3"]
    C1, Cin = w1.shape[0], w1.shape[1]
    C2 = w2.shape[0]
    F = w3.shape[0]

    sel1 = _col_select(14, 30)                                   # (4, 30, 14)
    sel2 = _col_select(7, 16)                                    # (4, 16, 7)
    # cw[kh, cin*Win + wp, c*Wgrp + col] = W[c, cin, kh, wp - 2*ow]
    cw1 = jnp.einsum('xwo,cikx->kiwco', sel1, w1)                # (4,Cin,30,C1,14)
    cw1 = jnp.pad(cw1, ((0, 0),) * 4 + ((1, 1),))                # add conv2 pad cols
    cw1 = cw1.reshape(4, Cin * 30, C1 * 16)
    cw2 = jnp.einsum('xwo,cikx->kiwco', sel2, w2).reshape(4, C1 * 16, C2 * 7)

    ab1 = jnp.concatenate(
        [jnp.pad(jnp.repeat(p["g1"][:, None], 14, axis=1), ((0, 0), (1, 1))
                 ).reshape(1, C1 * 16),
         jnp.pad(jnp.repeat(p["beta1"][:, None], 14, axis=1), ((0, 0), (1, 1))
                 ).reshape(1, C1 * 16)], axis=0)                 # zeros on pad lanes
    ab2 = jnp.stack([jnp.repeat(p["g2"], 7), jnp.repeat(p["beta2"], 7)], axis=0)

    # Fold Linear(F, 1) into the 7x7 head conv (exact: no nonlinearity between).
    wf = (p["wl"].T @ w3.reshape(F, -1)).reshape(C2, 7, 7)
    wh = jnp.transpose(wf, (1, 0, 2)).reshape(7, C2 * 7)         # [kh3, (c2, kw3)]
    bh = (p["b3"] @ p["wl"] + p["bl"]).reshape(1, 1)

    return dict(
        rs1=_row_select(14, 30), cw1=cw1, p1=_channel_projector(C1, 14, 1), ab1=ab1,
        rs2=_row_select(7, 16), cw2=cw2, p2=_channel_projector(C2, 7, 0), ab2=ab2,
        wh=wh, bh=bh)


# ---------------------------------------------------------------------------
# Raw parameters (PyTorch layout) and pure-JAX reference (train() mode)
# ---------------------------------------------------------------------------
def init_params(key, input_channels=1, features=32):
    f4, f2 = features // 4, features // 2
    ks = jax.random.split(key, 12)

    def nrm(k, shape, scale):
        return scale * jax.random.normal(k, shape, jnp.float32)

    return dict(
        w1=nrm(ks[0], (f4, input_channels, 4, 4), 0.05),
        b1=nrm(ks[1], (f4,), 0.1),
        g1=1.0 + nrm(ks[2], (f4,), 0.1),
        beta1=nrm(ks[3], (f4,), 0.1),
        w2=nrm(ks[4], (f2, f4, 4, 4), 0.05),
        b2=nrm(ks[5], (f2,), 0.1),
        g2=1.0 + nrm(ks[6], (f2,), 0.1),
        beta2=nrm(ks[7], (f2,), 0.1),
        w3=nrm(ks[8], (features, f2, 7, 7), 0.05),
        b3=nrm(ks[9], (features,), 0.05),
        wl=nrm(ks[10], (features, 1), 0.05),   # Linear(features, 1) weight^T
        bl=nrm(ks[11], (1,), 0.05),
    )


def reference_forward(x, p):
    def conv(x, w, b, stride, pad):
        y = jax.lax.conv_general_dilated(
            x, w, (stride, stride), [(pad, pad), (pad, pad)],
            dimension_numbers=("NCHW", "OIHW", "NCHW"))
        return y + b.reshape(1, -1, 1, 1)

    def bn_lrelu(x, g, b):
        mean = x.mean(axis=(0, 2, 3), keepdims=True)
        var = jnp.square(x - mean).mean(axis=(0, 2, 3), keepdims=True)
        xn = (x - mean) * jax.lax.rsqrt(var + BN_EPS)
        y = g.reshape(1, -1, 1, 1) * xn + b.reshape(1, -1, 1, 1)
        return jnp.where(y >= 0, y, LRELU_SLOPE * y)

    x1 = bn_lrelu(conv(x, p["w1"], p["b1"], 2, 1), p["g1"], p["beta1"])
    x2 = bn_lrelu(conv(x1, p["w2"], p["b2"], 2, 1), p["g2"], p["beta2"])
    h = conv(x2, p["w3"], p["b3"], 1, 0).reshape(x.shape[0], -1)   # Flatten
    return jax.nn.sigmoid(h @ p["wl"] + p["bl"])                   # Linear + Sigmoid


if __name__ == "__main__":
    key = jax.random.PRNGKey(0)
    kx, kparam = jax.random.split(key)
    # 28x28 spatial is implied by the 7x7 valid head conv after two stride-2 convs
    x = jax.random.normal(kx, (2, 1, 28, 28), jnp.float32)
    raw_params = init_params(kparam, input_channels=1, features=32)
    kernel_params = prepare_kernel_params(raw_params)

    out = jax.block_until_ready(jax.jit(discriminator_forward)(x, kernel_params))
    ref = jax.block_until_ready(jax.jit(reference_forward)(x, raw_params))

    assert out.shape == (2, 1), out.shape
    assert bool(jnp.all(jnp.isfinite(out)))
    assert bool(jnp.all((out >= 0.0) & (out <= 1.0)))              # sigmoid range
    assert bool(jnp.allclose(out, ref, atol=1e-3, rtol=1e-3)), (out, ref)
    print("KERNEL_OK")
</pallas_src>

<mosaic_0001>
module attributes {stable_mosaic.version = 11 : i64} {
  func.func @_discriminator_kernel(%arg0: memref<2x30x30xf32, #tpu.memory_space<vmem>>, %arg1: memref<4x14x30xf32, #tpu.memory_space<vmem>>, %arg2: memref<4x30x128xf32, #tpu.memory_space<vmem>>, %arg3: memref<128x128xf32, #tpu.memory_space<vmem>>, %arg4: memref<2x128xf32, #tpu.memory_space<vmem>>, %arg5: memref<4x7x16xf32, #tpu.memory_space<vmem>>, %arg6: memref<4x128x112xf32, #tpu.memory_space<vmem>>, %arg7: memref<112x112xf32, #tpu.memory_space<vmem>>, %arg8: memref<2x112xf32, #tpu.memory_space<vmem>>, %arg9: memref<7x112xf32, #tpu.memory_space<vmem>>, %arg10: memref<1x1xf32, #tpu.memory_space<vmem>>, %arg11: memref<2x1xf32, #tpu.memory_space<vmem>>) attributes {dimension_semantics = [], scalar_prefetch = 0 : i64, scratch_operands = 0 : i64, tpu.core_type = #tpu.core_type<tc>} {
    %c0 = arith.constant 0 : index
    %c0_0 = arith.constant 0 : index
    %c0_1 = arith.constant 0 : index
    %0 = vector.load %arg0[%c0, %c0_0, %c0_1] : memref<2x30x30xf32, #tpu.memory_space<vmem>>, vector<1x30x30xf32>
    %1 = vector.shape_cast %0 : vector<1x30x30xf32> to vector<30x30xf32>
    %c0_2 = arith.constant 0 : index
    %c0_3 = arith.constant 0 : index
    %c0_4 = arith.constant 0 : index
    %2 = vector.load %arg1[%c0_2, %c0_3, %c0_4] : memref<4x14x30xf32, #tpu.memory_space<vmem>>, vector<1x14x30xf32>
    %3 = vector.shape_cast %2 : vector<1x14x30xf32> to vector<14x30xf32>
    %cst = arith.constant dense<0.000000e+00> : vector<14x30xf32>
    %4 = tpu.matmul %3, %1, %cst {dimension_numbers = #tpu.dot_dimension_numbers<[1], [0], [0], [1], [0, 0, 1, 1], [], []>} : vector<14x30xf32>, vector<30x30xf32>, vector<14x30xf32> -> vector<14x30xf32>
    %c0_5 = arith.constant 0 : index
    %c0_6 = arith.constant 0 : index
    %c0_7 = arith.constant 0 : index
    %5 = vector.load %arg2[%c0_5, %c0_6, %c0_7] : memref<4x30x128xf32, #tpu.memory_space<vmem>>, vector<1x30x128xf32>
    %6 = vector.shape_cast %5 : vector<1x30x128xf32> to vector<30x128xf32>
    %cst_8 = arith.constant dense<0.000000e+00> : vector<14x128xf32>
    %7 = tpu.matmul %4, %6, %cst_8 {dimension_numbers = #tpu.dot_dimension_numbers<[1], [0], [0], [1], [0, 0, 1, 1], [], []>} : vector<14x30xf32>, vector<30x128xf32>, vector<14x128xf32> -> vector<14x128xf32>
    %c1 = arith.constant 1 : index
    %c0_9 = arith.constant 0 : index
    %c0_10 = arith.constant 0 : index
    %8 = vector.load %arg1[%c1, %c0_9, %c0_10] : memref<4x14x30xf32, #tpu.memory_space<vmem>>, vector<1x14x30xf32>
    %9 = vector.shape_cast %8 : vector<1x14x30xf32> to vector<14x30xf32>
    %cst_11 = arith.constant dense<0.000000e+00> : vector<14x30xf32>
    %10 = tpu.matmul %9, %1, %cst_11 {dimension_numbers = #tpu.dot_dimension_numbers<[1], [0], [0], [1], [0, 0, 1, 1], [], []>} : vector<14x30xf32>, vector<30x30xf32>, vector<14x30xf32> -> vector<14x30xf32>
    %c1_12 = arith.constant 1 : index
    %c0_13 = arith.constant 0 : index
    %c0_14 = arith.constant 0 : index
    %11 = vector.load %arg2[%c1_12, %c0_13, %c0_14] : memref<4x30x128xf32, #tpu.memory_space<vmem>>, vector<1x30x128xf32>
    %12 = vector.shape_cast %11 : vector<1x30x128xf32> to vector<30x128xf32>
    %cst_15 = arith.constant dense<0.000000e+00> : vector<14x128xf32>
    %13 = tpu.matmul %10, %12, %cst_15 {dimension_numbers = #tpu.dot_dimension_numbers<[1], [0], [0], [1], [0, 0, 1, 1], [], []>} : vector<14x30xf32>, vector<30x128xf32>, vector<14x128xf32> -> vector<14x128xf32>
    %14 = arith.addf %7, %13 : vector<14x128xf32>
    %c2 = arith.constant 2 : index
    %c0_16 = arith.constant 0 : index
    %c0_17 = arith.constant 0 : index
    %15 = vector.load %arg1[%c2, %c0_16, %c0_17] : memref<4x14x30xf32, #tpu.memory_space<vmem>>, vector<1x14x30xf32>
    %16 = vector.shape_cast %15 : vector<1x14x30xf32> to vector<14x30xf32>
    %cst_18 = arith.constant dense<0.000000e+00> : vector<14x30xf32>
    %17 = tpu.matmul %16, %1, %cst_18 {dimension_numbers = #tpu.dot_dimension_numbers<[1], [0], [0], [1], [0, 0, 1, 1], [], []>} : vector<14x30xf32>, vector<30x30xf32>, vector<14x30xf32> -> vector<14x30xf32>
    %c2_19 = arith.constant 2 : index
    %c0_20 = arith.constant 0 : index
    %c0_21 = arith.constant 0 : index
    %18 = vector.load %arg2[%c2_19, %c0_20, %c0_21] : memref<4x30x128xf32, #tpu.memory_space<vmem>>, vector<1x30x128xf32>
    %19 = vector.shape_cast %18 : vector<1x30x128xf32> to vector<30x128xf32>
    %cst_22 = arith.constant dense<0.000000e+00> : vector<14x128xf32>
    %20 = tpu.matmul %17, %19, %cst_22 {dimension_numbers = #tpu.dot_dimension_numbers<[1], [0], [0], [1], [0, 0, 1, 1], [], []>} : vector<14x30xf32>, vector<30x128xf32>, vector<14x128xf32> -> vector<14x128xf32>
    %21 = arith.addf %14, %20 : vector<14x128xf32>
    %c3 = arith.constant 3 : index
    %c0_23 = arith.constant 0 : index
    %c0_24 = arith.constant 0 : index
    %22 = vector.load %arg1[%c3, %c0_23, %c0_24] : memref<4x14x30xf32, #tpu.memory_space<vmem>>, vector<1x14x30xf32>
    %23 = vector.shape_cast %22 : vector<1x14x30xf32> to vector<14x30xf32>
    %cst_25 = arith.constant dense<0.000000e+00> : vector<14x30xf32>
    %24 = tpu.matmul %23, %1, %cst_25 {dimension_numbers = #tpu.dot_dimension_numbers<[1], [0], [0], [1], [0, 0, 1, 1], [], []>} : vector<14x30xf32>, vector<30x30xf32>, vector<14x30xf32> -> vector<14x30xf32>
    %c3_26 = arith.constant 3 : index
    %c0_27 = arith.constant 0 : index
    %c0_28 = arith.constant 0 : index
    %25 = vector.load %arg2[%c3_26, %c0_27, %c0_28] : memref<4x30x128xf32, #tpu.memory_space<vmem>>, vector<1x30x128xf32>
    %26 = vector.shape_cast %25 : vector<1x30x128xf32> to vector<30x128xf32>
    %cst_29 = arith.constant dense<0.000000e+00> : vector<14x128xf32>
    %27 = tpu.matmul %24, %26, %cst_29 {dimension_numbers = #tpu.dot_dimension_numbers<[1], [0], [0], [1], [0, 0, 1, 1], [], []>} : vector<14x30xf32>, vector<30x128xf32>, vector<14x128xf32> -> vector<14x128xf32>
    %28 = arith.addf %21, %27 : vector<14x128xf32>
    %c1_30 = arith.constant 1 : index
    %c0_31 = arith.constant 0 : index
    %c0_32 = arith.constant 0 : index
    %29 = vector.load %arg0[%c1_30, %c0_31, %c0_32] : memref<2x30x30xf32, #tpu.memory_space<vmem>>, vector<1x30x30xf32>
    %30 = vector.shape_cast %29 : vector<1x30x30xf32> to vector<30x30xf32>
    %c0_33 = arith.constant 0 : index
    %c0_34 = arith.constant 0 : index
    %c0_35 = arith.constant 0 : index
    %31 = vector.load %arg1[%c0_33, %c0_34, %c0_35] : memref<4x14x30xf32, #tpu.memory_space<vmem>>, vector<1x14x30xf32>
    %32 = vector.shape_cast %31 : vector<1x14x30xf32> to vector<14x30xf32>
    %cst_36 = arith.constant dense<0.000000e+00> : vector<14x30xf32>
    %33 = tpu.matmul %32, %30, %cst_36 {dimension_numbers = #tpu.dot_dimension_numbers<[1], [0], [0], [1], [0, 0, 1, 1], [], []>} : vector<14x30xf32>, vector<30x30xf32>, vector<14x30xf32> -> vector<14x30xf32>
    %c0_37 = arith.constant 0 : index
    %c0_38 = arith.constant 0 : index
    %c0_39 = arith.constant 0 : index
    %34 = vector.load %arg2[%c0_37, %c0_38, %c0_39] : memref<4x30x128xf32, #tpu.memory_space<vmem>>, vector<1x30x128xf32>
    %35 = vector.shape_cast %34 : vector<1x30x128xf32> to vector<30x128xf32>
    %cst_40 = arith.constant dense<0.000000e+00> : vector<14x128xf32>
    %36 = tpu.matmul %33, %35, %cst_40 {dimension_numbers = #tpu.dot_dimension_numbers<[1], [0], [0], [1], [0, 0, 1, 1], [], []>} : vector<14x30xf32>, vector<30x128xf32>, vector<14x128xf32> -> vector<14x128xf32>
    %c1_41 = arith.constant 1 : index
    %c0_42 = arith.constant 0 : index
    %c0_43 = arith.constant 0 : index
    %37 = vector.load %arg1[%c1_41, %c0_42, %c0_43] : memref<4x14x30xf32, #tpu.memory_space<vmem>>, vector<1x14x30xf32>
    %38 = vector.shape_cast %37 : vector<1x14x30xf32> to vector<14x30xf32>
    %cst_44 = arith.constant dense<0.000000e+00> : vector<14x30xf32>
    %39 = tpu.matmul %38, %30, %cst_44 {dimension_numbers = #tpu.dot_dimension_numbers<[1], [0], [0], [1], [0, 0, 1, 1], [], []>} : vector<14x30xf32>, vector<30x30xf32>, vector<14x30xf32> -> vector<14x30xf32>
    %c1_45 = arith.constant 1 : index
    %c0_46 = arith.constant 0 : index
    %c0_47 = arith.constant 0 : index
    %40 = vector.load %arg2[%c1_45, %c0_46, %c0_47] : memref<4x30x128xf32, #tpu.memory_space<vmem>>, vector<1x30x128xf32>
    %41 = vector.shape_cast %40 : vector<1x30x128xf32> to vector<30x128xf32>
    %cst_48 = arith.constant dense<0.000000e+00> : vector<14x128xf32>
    %42 = tpu.matmul %39, %41, %cst_48 {dimension_numbers = #tpu.dot_dimension_numbers<[1], [0], [0], [1], [0, 0, 1, 1], [], []>} : vector<14x30xf32>, vector<30x128xf32>, vector<14x128xf32> -> vector<14x128xf32>
    %43 = arith.addf %36, %42 : vector<14x128xf32>
    %c2_49 = arith.constant 2 : index
    %c0_50 = arith.constant 0 : index
    %c0_51 = arith.constant 0 : index
    %44 = vector.load %arg1[%c2_49, %c0_50, %c0_51] : memref<4x14x30xf32, #tpu.memory_space<vmem>>, vector<1x14x30xf32>
    %45 = vector.shape_cast %44 : vector<1x14x30xf32> to vector<14x30xf32>
    %cst_52 = arith.constant dense<0.000000e+00> : vector<14x30xf32>
    %46 = tpu.matmul %45, %30, %cst_52 {dimension_numbers = #tpu.dot_dimension_numbers<[1], [0], [0], [1], [0, 0, 1, 1], [], []>} : vector<14x30xf32>, vector<30x30xf32>, vector<14x30xf32> -> vector<14x30xf32>
    %c2_53 = arith.constant 2 : index
    %c0_54 = arith.constant 0 : index
    %c0_55 = arith.constant 0 : index
    %47 = vector.load %arg2[%c2_53, %c0_54, %c0_55] : memref<4x30x128xf32, #tpu.memory_space<vmem>>, vector<1x30x128xf32>
    %48 = vector.shape_cast %47 : vector<1x30x128xf32> to vector<30x128xf32>
    %cst_56 = arith.constant dense<0.000000e+00> : vector<14x128xf32>
    %49 = tpu.matmul %46, %48, %cst_56 {dimension_numbers = #tpu.dot_dimension_numbers<[1], [0], [0], [1], [0, 0, 1, 1], [], []>} : vector<14x30xf32>, vector<30x128xf32>, vector<14x128xf32> -> vector<14x128xf32>
    %50 = arith.addf %43, %49 : vector<14x128xf32>
    %c3_57 = arith.constant 3 : index
    %c0_58 = arith.constant 0 : index
    %c0_59 = arith.constant 0 : index
    %51 = vector.load %arg1[%c3_57, %c0_58, %c0_59] : memref<4x14x30xf32, #tpu.memory_space<vmem>>, vector<1x14x30xf32>
    %52 = vector.shape_cast %51 : vector<1x14x30xf32> to vector<14x30xf32>
    %cst_60 = arith.constant dense<0.000000e+00> : vector<14x30xf32>
    %53 = tpu.matmul %52, %30, %cst_60 {dimension_numbers = #tpu.dot_dimension_numbers<[1], [0], [0], [1], [0, 0, 1, 1], [], []>} : vector<14x30xf32>, vector<30x30xf32>, vector<14x30xf32> -> vector<14x30xf32>
    %c3_61 = arith.constant 3 : index
    %c0_62 = arith.constant 0 : index
    %c0_63 = arith.constant 0 : index
    %54 = vector.load %arg2[%c3_61, %c0_62, %c0_63] : memref<4x30x128xf32, #tpu.memory_space<vmem>>, vector<1x30x128xf32>
    %55 = vector.shape_cast %54 : vector<1x30x128xf32> to vector<30x128xf32>
    %cst_64 = arith.constant dense<0.000000e+00> : vector<14x128xf32>
    %56 = tpu.matmul %53, %55, %cst_64 {dimension_numbers = #tpu.dot_dimension_numbers<[1], [0], [0], [1], [0, 0, 1, 1], [], []>} : vector<14x30xf32>, vector<30x128xf32>, vector<14x128xf32> -> vector<14x128xf32>
    %57 = arith.addf %50, %56 : vector<14x128xf32>
    %cst_65 = arith.constant dense<0.000000e+00> : vector<128xf32>
    %58 = vector.multi_reduction <add>, %28, %cst_65 [0] : vector<14x128xf32> to vector<128xf32>
    %59 = vector.shape_cast %58 : vector<128xf32> to vector<1x128xf32>
    %60 = arith.mulf %28, %28 : vector<14x128xf32>
    %cst_66 = arith.constant dense<0.000000e+00> : vector<128xf32>
    %61 = vector.multi_reduction <add>, %60, %cst_66 [0] : vector<14x128xf32> to vector<128xf32>
    %62 = vector.shape_cast %61 : vector<128xf32> to vector<1x128xf32>
    %cst_67 = arith.constant dense<0.000000e+00> : vector<128xf32>
    %63 = vector.multi_reduction <add>, %57, %cst_67 [0] : vector<14x128xf32> to vector<128xf32>
    %64 = vector.shape_cast %63 : vector<128xf32> to vector<1x128xf32>
    %65 = arith.mulf %57, %57 : vector<14x128xf32>
    %cst_68 = arith.constant dense<0.000000e+00> : vector<128xf32>
    %66 = vector.multi_reduction <add>, %65, %cst_68 [0] : vector<14x128xf32> to vector<128xf32>
    %67 = vector.shape_cast %66 : vector<128xf32> to vector<1x128xf32>
    %68 = arith.addf %59, %64 : vector<1x128xf32>
    %69 = arith.addf %62, %67 : vector<1x128xf32>
    %c0_69 = arith.constant 0 : index
    %c0_70 = arith.constant 0 : index
    %70 = vector.load %arg3[%c0_69, %c0_70] : memref<128x128xf32, #tpu.memory_space<vmem>>, vector<128x128xf32>
    %cst_71 = arith.constant dense<0.000000e+00> : vector<1x128xf32>
    %71 = tpu.matmul %68, %70, %cst_71 {dimension_numbers = #tpu.dot_dimension_numbers<[1], [0], [0], [1], [0, 0, 1, 1], [], []>} : vector<1x128xf32>, vector<128x128xf32>, vector<1x128xf32> -> vector<1x128xf32>
    %cst_72 = arith.constant 0.00255102036 : f32
    %72 = vector.broadcast %cst_72 : f32 to vector<1x128xf32>
    %73 = arith.mulf %71, %72 : vector<1x128xf32>
    %c0_73 = arith.constant 0 : index
    %c0_74 = arith.constant 0 : index
    %74 = vector.load %arg3[%c0_73, %c0_74] : memref<128x128xf32, #tpu.memory_space<vmem>>, vector<128x128xf32>
    %cst_75 = arith.constant dense<0.000000e+00> : vector<1x128xf32>
    %75 = tpu.matmul %69, %74, %cst_75 {dimension_numbers = #tpu.dot_dimension_numbers<[1], [0], [0], [1], [0, 0, 1, 1], [], []>} : vector<1x128xf32>, vector<128x128xf32>, vector<1x128xf32> -> vector<1x128xf32>
    %cst_76 = arith.constant 0.00255102036 : f32
    %76 = vector.broadcast %cst_76 : f32 to vector<1x128xf32>
    %77 = arith.mulf %75, %76 : vector<1x128xf32>
    %78 = arith.mulf %73, %73 : vector<1x128xf32>
    %79 = arith.subf %77, %78 : vector<1x128xf32>
    %c0_77 = arith.constant 0 : index
    %c0_78 = arith.constant 0 : index
    %80 = vector.load %arg4[%c0_77, %c0_78] : memref<2x128xf32, #tpu.memory_space<vmem>>, vector<2x128xf32>
    %81 = vector.extract_strided_slice %80 {offsets = [0, 0], sizes = [1, 128], strides = [1, 1]} : vector<2x128xf32> to vector<1x128xf32>
    %cst_79 = arith.constant 9.99999974E-6 : f32
    %82 = vector.broadcast %cst_79 : f32 to vector<1x128xf32>
    %83 = arith.addf %79, %82 : vector<1x128xf32>
    %84 = math.rsqrt %83 : vector<1x128xf32>
    %85 = arith.mulf %81, %84 : vector<1x128xf32>
    %86 = vector.extract_strided_slice %80 {offsets = [1, 0], sizes = [1, 128], strides = [1, 1]} : vector<2x128xf32> to vector<1x128xf32>
    %87 = arith.mulf %85, %73 : vector<1x128xf32>
    %88 = arith.subf %86, %87 : vector<1x128xf32>
    %cst_80 = arith.constant 0.000000e+00 : f32
    %89 = vector.broadcast %cst_80 : f32 to vector<1x128xf32>
    %90 = vector.broadcast %85 : vector<1x128xf32> to vector<14x128xf32>
    %91 = arith.mulf %28, %90 : vector<14x128xf32>
    %92 = vector.broadcast %88 : vector<1x128xf32> to vector<14x128xf32>
    %93 = arith.addf %91, %92 : vector<14x128xf32>
    %cst_81 = arith.constant 0.000000e+00 : f32
    %94 = vector.broadcast %cst_81 : f32 to vector<14x128xf32>
    %95 = arith.cmpf oge, %93, %94 : vector<14x128xf32>
    %cst_82 = arith.constant 2.000000e-01 : f32
    %96 = vector.broadcast %cst_82 : f32 to vector<14x128xf32>
    %97 = arith.mulf %96, %93 : vector<14x128xf32>
    %98 = arith.select %95, %93, %97 : vector<14x128xi1>, vector<14x128xf32>
    %99 = tpu.concatenate %89, %98, %89 in 0 : vector<1x128xf32>, vector<14x128xf32>, vector<1x128xf32> -> vector<16x128xf32>
    %100 = vector.broadcast %85 : vector<1x128xf32> to vector<14x128xf32>
    %101 = arith.mulf %57, %100 : vector<14x128xf32>
    %102 = vector.broadcast %88 : vector<1x128xf32> to vector<14x128xf32>
    %103 = arith.addf %101, %102 : vector<14x128xf32>
    %cst_83 = arith.constant 0.000000e+00 : f32
    %104 = vector.broadcast %cst_83 : f32 to vector<14x128xf32>
    %105 = arith.cmpf oge, %103, %104 : vector<14x128xf32>
    %cst_84 = arith.constant 2.000000e-01 : f32
    %106 = vector.broadcast %cst_84 : f32 to vector<14x128xf32>
    %107 = arith.mulf %106, %103 : vector<14x128xf32>
    %108 = arith.select %105, %103, %107 : vector<14x128xi1>, vector<14x128xf32>
    %109 = tpu.concatenate %89, %108, %89 in 0 : vector<1x128xf32>, vector<14x128xf32>, vector<1x128xf32> -> vector<16x128xf32>
    %c0_85 = arith.constant 0 : index
    %c0_86 = arith.constant 0 : index
    %c0_87 = arith.constant 0 : index
    %110 = vector.load %arg5[%c0_85, %c0_86, %c0_87] : memref<4x7x16xf32, #tpu.memory_space<vmem>>, vector<1x7x16xf32>
    %111 = vector.shape_cast %110 : vector<1x7x16xf32> to vector<7x16xf32>
    %cst_88 = arith.constant dense<0.000000e+00> : vector<7x128xf32>
    %112 = tpu.matmul %111, %99, %cst_88 {dimension_numbers = #tpu.dot_dimension_numbers<[1], [0], [0], [1], [0, 0, 1, 1], [], []>} : vector<7x16xf32>, vector<16x128xf32>, vector<7x128xf32> -> vector<7x128xf32>
    %c0_89 = arith.constant 0 : index
    %c0_90 = arith.constant 0 : index
    %c0_91 = arith.constant 0 : index
    %113 = vector.load %arg6[%c0_89, %c0_90, %c0_91] : memref<4x128x112xf32, #tpu.memory_space<vmem>>, vector<1x128x112xf32>
    %114 = vector.shape_cast %113 : vector<1x128x112xf32> to vector<128x112xf32>
    %cst_92 = arith.constant dense<0.000000e+00> : vector<7x112xf32>
    %115 = tpu.matmul %112, %114, %cst_92 {dimension_numbers = #tpu.dot_dimension_numbers<[1], [0], [0], [1], [0, 0, 1, 1], [], []>} : vector<7x128xf32>, vector<128x112xf32>, vector<7x112xf32> -> vector<7x112xf32>
    %c1_93 = arith.constant 1 : index
    %c0_94 = arith.constant 0 : index
    %c0_95 = arith.constant 0 : index
    %116 = vector.load %arg5[%c1_93, %c0_94, %c0_95] : memref<4x7x16xf32, #tpu.memory_space<vmem>>, vector<1x7x16xf32>
    %117 = vector.shape_cast %116 : vector<1x7x16xf32> to vector<7x16xf32>
    %cst_96 = arith.constant dense<0.000000e+00> : vector<7x128xf32>
    %118 = tpu.matmul %117, %99, %cst_96 {dimension_numbers = #tpu.dot_dimension_numbers<[1], [0], [0], [1], [0, 0, 1, 1], [], []>} : vector<7x16xf32>, vector<16x128xf32>, vector<7x128xf32> -> vector<7x128xf32>
    %c1_97 = arith.constant 1 : index
    %c0_98 = arith.constant 0 : index
    %c0_99 = arith.constant 0 : index
    %119 = vector.load %arg6[%c1_97, %c0_98, %c0_99] : memref<4x128x112xf32, #tpu.memory_space<vmem>>, vector<1x128x112xf32>
    %120 = vector.shape_cast %119 : vector<1x128x112xf32> to vector<128x112xf32>
    %cst_100 = arith.constant dense<0.000000e+00> : vector<7x112xf32>
    %121 = tpu.matmul %118, %120, %cst_100 {dimension_numbers = #tpu.dot_dimension_numbers<[1], [0], [0], [1], [0, 0, 1, 1], [], []>} : vector<7x128xf32>, vector<128x112xf32>, vector<7x112xf32> -> vector<7x112xf32>
    %122 = arith.addf %115, %121 : vector<7x112xf32>
    %c2_101 = arith.constant 2 : index
    %c0_102 = arith.constant 0 : index
    %c0_103 = arith.constant 0 : index
    %123 = vector.load %arg5[%c2_101, %c0_102, %c0_103] : memref<4x7x16xf32, #tpu.memory_space<vmem>>, vector<1x7x16xf32>
    %124 = vector.shape_cast %123 : vector<1x7x16xf32> to vector<7x16xf32>
    %cst_104 = arith.constant dense<0.000000e+00> : vector<7x128xf32>
    %125 = tpu.matmul %124, %99, %cst_104 {dimension_numbers = #tpu.dot_dimension_numbers<[1], [0], [0], [1], [0, 0, 1, 1], [], []>} : vector<7x16xf32>, vector<16x128xf32>, vector<7x128xf32> -> vector<7x128xf32>
    %c2_105 = arith.constant 2 : index
    %c0_106 = arith.constant 0 : index
    %c0_107 = arith.constant 0 : index
    %126 = vector.load %arg6[%c2_105, %c0_106, %c0_107] : memref<4x128x112xf32, #tpu.memory_space<vmem>>, vector<1x128x112xf32>
    %127 = vector.shape_cast %126 : vector<1x128x112xf32> to vector<128x112xf32>
    %cst_108 = arith.constant dense<0.000000e+00> : vector<7x112xf32>
    %128 = tpu.matmul %125, %127, %cst_108 {dimension_numbers = #tpu.dot_dimension_numbers<[1], [0], [0], [1], [0, 0, 1, 1], [], []>} : vector<7x128xf32>, vector<128x112xf32>, vector<7x112xf32> -> vector<7x112xf32>
    %129 = arith.addf %122, %128 : vector<7x112xf32>
    %c3_109 = arith.constant 3 : index
    %c0_110 = arith.constant 0 : index
    %c0_111 = arith.constant 0 : index
    %130 = vector.load %arg5[%c3_109, %c0_110, %c0_111] : memref<4x7x16xf32, #tpu.memory_space<vmem>>, vector<1x7x16xf32>
    %131 = vector.shape_cast %130 : vector<1x7x16xf32> to vector<7x16xf32>
    %cst_112 = arith.constant dense<0.000000e+00> : vector<7x128xf32>
    %132 = tpu.matmul %131, %99, %cst_112 {dimension_numbers = #tpu.dot_dimension_numbers<[1], [0], [0], [1], [0, 0, 1, 1], [], []>} : vector<7x16xf32>, vector<16x128xf32>, vector<7x128xf32> -> vector<7x128xf32>
    %c3_113 = arith.constant 3 : index
    %c0_114 = arith.constant 0 : index
    %c0_115 = arith.constant 0 : index
    %133 = vector.load %arg6[%c3_113, %c0_114, %c0_115] : memref<4x128x112xf32, #tpu.memory_space<vmem>>, vector<1x128x112xf32>
    %134 = vector.shape_cast %133 : vector<1x128x112xf32> to vector<128x112xf32>
    %cst_116 = arith.constant dense<0.000000e+00> : vector<7x112xf32>
    %135 = tpu.matmul %132, %134, %cst_116 {dimension_numbers = #tpu.dot_dimension_numbers<[1], [0], [0], [1], [0, 0, 1, 1], [], []>} : vector<7x128xf32>, vector<128x112xf32>, vector<7x112xf32> -> vector<7x112xf32>
    %136 = arith.addf %129, %135 : vector<7x112xf32>
    %c0_117 = arith.constant 0 : index
    %c0_118 = arith.constant 0 : index
    %c0_119 = arith.constant 0 : index
    %137 = vector.load %arg5[%c0_117, %c0_118, %c0_119] : memref<4x7x16xf32, #tpu.memory_space<vmem>>, vector<1x7x16xf32>
    %138 = vector.shape_cast %137 : vector<1x7x16xf32> to vector<7x16xf32>
    %cst_120 = arith.constant dense<0.000000e+00> : vector<7x128xf32>
    %139 = tpu.matmul %138, %109, %cst_120 {dimension_numbers = #tpu.dot_dimension_numbers<[1], [0], [0], [1], [0, 0, 1, 1], [], []>} : vector<7x16xf32>, vector<16x128xf32>, vector<7x128xf32> -> vector<7x128xf32>
    %c0_121 = arith.constant 0 : index
    %c0_122 = arith.constant 0 : index
    %c0_123 = arith.constant 0 : index
    %140 = vector.load %arg6[%c0_121, %c0_122, %c0_123] : memref<4x128x112xf32, #tpu.memory_space<vmem>>, vector<1x128x112xf32>
    %141 = vector.shape_cast %140 : vector<1x128x112xf32> to vector<128x112xf32>
    %cst_124 = arith.constant dense<0.000000e+00> : vector<7x112xf32>
    %142 = tpu.matmul %139, %141, %cst_124 {dimension_numbers = #tpu.dot_dimension_numbers<[1], [0], [0], [1], [0, 0, 1, 1], [], []>} : vector<7x128xf32>, vector<128x112xf32>, vector<7x112xf32> -> vector<7x112xf32>
    %c1_125 = arith.constant 1 : index
    %c0_126 = arith.constant 0 : index
    %c0_127 = arith.constant 0 : index
    %143 = vector.load %arg5[%c1_125, %c0_126, %c0_127] : memref<4x7x16xf32, #tpu.memory_space<vmem>>, vector<1x7x16xf32>
    %144 = vector.shape_cast %143 : vector<1x7x16xf32> to vector<7x16xf32>
    %cst_128 = arith.constant dense<0.000000e+00> : vector<7x128xf32>
    %145 = tpu.matmul %144, %109, %cst_128 {dimension_numbers = #tpu.dot_dimension_numbers<[1], [0], [0], [1], [0, 0, 1, 1], [], []>} : vector<7x16xf32>, vector<16x128xf32>, vector<7x128xf32> -> vector<7x128xf32>
    %c1_129 = arith.constant 1 : index
    %c0_130 = arith.constant 0 : index
    %c0_131 = arith.constant 0 : index
    %146 = vector.load %arg6[%c1_129, %c0_130, %c0_131] : memref<4x128x112xf32, #tpu.memory_space<vmem>>, vector<1x128x112xf32>
    %147 = vector.shape_cast %146 : vector<1x128x112xf32> to vector<128x112xf32>
    %cst_132 = arith.constant dense<0.000000e+00> : vector<7x112xf32>
    %148 = tpu.matmul %145, %147, %cst_132 {dimension_numbers = #tpu.dot_dimension_numbers<[1], [0], [0], [1], [0, 0, 1, 1], [], []>} : vector<7x128xf32>, vector<128x112xf32>, vector<7x112xf32> -> vector<7x112xf32>
    %149 = arith.addf %142, %148 : vector<7x112xf32>
    %c2_133 = arith.constant 2 : index
    %c0_134 = arith.constant 0 : index
    %c0_135 = arith.constant 0 : index
    %150 = vector.load %arg5[%c2_133, %c0_134, %c0_135] : memref<4x7x16xf32, #tpu.memory_space<vmem>>, vector<1x7x16xf32>
    %151 = vector.shape_cast %150 : vector<1x7x16xf32> to vector<7x16xf32>
    %cst_136 = arith.constant dense<0.000000e+00> : vector<7x128xf32>
    %152 = tpu.matmul %151, %109, %cst_136 {dimension_numbers = #tpu.dot_dimension_numbers<[1], [0], [0], [1], [0, 0, 1, 1], [], []>} : vector<7x16xf32>, vector<16x128xf32>, vector<7x128xf32> -> vector<7x128xf32>
    %c2_137 = arith.constant 2 : index
    %c0_138 = arith.constant 0 : index
    %c0_139 = arith.constant 0 : index
    %153 = vector.load %arg6[%c2_137, %c0_138, %c0_139] : memref<4x128x112xf32, #tpu.memory_space<vmem>>, vector<1x128x112xf32>
    %154 = vector.shape_cast %153 : vector<1x128x112xf32> to vector<128x112xf32>
    %cst_140 = arith.constant dense<0.000000e+00> : vector<7x112xf32>
    %155 = tpu.matmul %152, %154, %cst_140 {dimension_numbers = #tpu.dot_dimension_numbers<[1], [0], [0], [1], [0, 0, 1, 1], [], []>} : vector<7x128xf32>, vector<128x112xf32>, vector<7x112xf32> -> vector<7x112xf32>
    %156 = arith.addf %149, %155 : vector<7x112xf32>
    %c3_141 = arith.constant 3 : index
    %c0_142 = arith.constant 0 : index
    %c0_143 = arith.constant 0 : index
    %157 = vector.load %arg5[%c3_141, %c0_142, %c0_143] : memref<4x7x16xf32, #tpu.memory_space<vmem>>, vector<1x7x16xf32>
    %158 = vector.shape_cast %157 : vector<1x7x16xf32> to vector<7x16xf32>
    %cst_144 = arith.constant dense<0.000000e+00> : vector<7x128xf32>
    %159 = tpu.matmul %158, %109, %cst_144 {dimension_numbers = #tpu.dot_dimension_numbers<[1], [0], [0], [1], [0, 0, 1, 1], [], []>} : vector<7x16xf32>, vector<16x128xf32>, vector<7x128xf32> -> vector<7x128xf32>
    %c3_145 = arith.constant 3 : index
    %c0_146 = arith.constant 0 : index
    %c0_147 = arith.constant 0 : index
    %160 = vector.load %arg6[%c3_145, %c0_146, %c0_147] : memref<4x128x112xf32, #tpu.memory_space<vmem>>, vector<1x128x112xf32>
    %161 = vector.shape_cast %160 : vector<1x128x112xf32> to vector<128x112xf32>
    %cst_148 = arith.constant dense<0.000000e+00> : vector<7x112xf32>
    %162 = tpu.matmul %159, %161, %cst_148 {dimension_numbers = #tpu.dot_dimension_numbers<[1], [0], [0], [1], [0, 0, 1, 1], [], []>} : vector<7x128xf32>, vector<128x112xf32>, vector<7x112xf32> -> vector<7x112xf32>
    %163 = arith.addf %156, %162 : vector<7x112xf32>
    %cst_149 = arith.constant dense<0.000000e+00> : vector<112xf32>
    %164 = vector.multi_reduction <add>, %136, %cst_149 [0] : vector<7x112xf32> to vector<112xf32>
    %165 = vector.shape_cast %164 : vector<112xf32> to vector<1x112xf32>
    %166 = arith.mulf %136, %136 : vector<7x112xf32>
    %cst_150 = arith.constant dense<0.000000e+00> : vector<112xf32>
    %167 = vector.multi_reduction <add>, %166, %cst_150 [0] : vector<7x112xf32> to vector<112xf32>
    %168 = vector.shape_cast %167 : vector<112xf32> to vector<1x112xf32>
    %cst_151 = arith.constant dense<0.000000e+00> : vector<112xf32>
    %169 = vector.multi_reduction <add>, %163, %cst_151 [0] : vector<7x112xf32> to vector<112xf32>
    %170 = vector.shape_cast %169 : vector<112xf32> to vector<1x112xf32>
    %171 = arith.mulf %163, %163 : vector<7x112xf32>
    %cst_152 = arith.constant dense<0.000000e+00> : vector<112xf32>
    %172 = vector.multi_reduction <add>, %171, %cst_152 [0] : vector<7x112xf32> to vector<112xf32>
    %173 = vector.shape_cast %172 : vector<112xf32> to vector<1x112xf32>
    %174 = arith.addf %165, %170 : vector<1x112xf32>
    %175 = arith.addf %168, %173 : vector<1x112xf32>
    %c0_153 = arith.constant 0 : index
    %c0_154 = arith.constant 0 : index
    %176 = vector.load %arg7[%c0_153, %c0_154] : memref<112x112xf32, #tpu.memory_space<vmem>>, vector<112x112xf32>
    %cst_155 = arith.constant dense<0.000000e+00> : vector<1x112xf32>
    %177 = tpu.matmul %174, %176, %cst_155 {dimension_numbers = #tpu.dot_dimension_numbers<[1], [0], [0], [1], [0, 0, 1, 1], [], []>} : vector<1x112xf32>, vector<112x112xf32>, vector<1x112xf32> -> vector<1x112xf32>
    %cst_156 = arith.constant 0.0102040814 : f32
    %178 = vector.broadcast %cst_156 : f32 to vector<1x112xf32>
    %179 = arith.mulf %177, %178 : vector<1x112xf32>
    %c0_157 = arith.constant 0 : index
    %c0_158 = arith.constant 0 : index
    %180 = vector.load %arg7[%c0_157, %c0_158] : memref<112x112xf32, #tpu.memory_space<vmem>>, vector<112x112xf32>
    %cst_159 = arith.constant dense<0.000000e+00> : vector<1x112xf32>
    %181 = tpu.matmul %175, %180, %cst_159 {dimension_numbers = #tpu.dot_dimension_numbers<[1], [0], [0], [1], [0, 0, 1, 1], [], []>} : vector<1x112xf32>, vector<112x112xf32>, vector<1x112xf32> -> vector<1x112xf32>
    %cst_160 = arith.constant 0.0102040814 : f32
    %182 = vector.broadcast %cst_160 : f32 to vector<1x112xf32>
    %183 = arith.mulf %181, %182 : vector<1x112xf32>
    %184 = arith.mulf %179, %179 : vector<1x112xf32>
    %185 = arith.subf %183, %184 : vector<1x112xf32>
    %c0_161 = arith.constant 0 : index
    %c0_162 = arith.constant 0 : index
    %186 = vector.load %arg8[%c0_161, %c0_162] : memref<2x112xf32, #tpu.memory_space<vmem>>, vector<2x112xf32>
    %187 = vector.extract_strided_slice %186 {offsets = [0, 0], sizes = [1, 112], strides = [1, 1]} : vector<2x112xf32> to vector<1x112xf32>
    %cst_163 = arith.constant 9.99999974E-6 : f32
    %188 = vector.broadcast %cst_163 : f32 to vector<1x112xf32>
    %189 = arith.addf %185, %188 : vector<1x112xf32>
    %190 = math.rsqrt %189 : vector<1x112xf32>
    %191 = arith.mulf %187, %190 : vector<1x112xf32>
    %192 = vector.extract_strided_slice %186 {offsets = [1, 0], sizes = [1, 112], strides = [1, 1]} : vector<2x112xf32> to vector<1x112xf32>
    %193 = arith.mulf %191, %179 : vector<1x112xf32>
    %194 = arith.subf %192, %193 : vector<1x112xf32>
    %c0_164 = arith.constant 0 : index
    %c0_165 = arith.constant 0 : index
    %195 = vector.load %arg9[%c0_164, %c0_165] : memref<7x112xf32, #tpu.memory_space<vmem>>, vector<7x112xf32>
    %196 = vector.broadcast %191 : vector<1x112xf32> to vector<7x112xf32>
    %197 = arith.mulf %136, %196 : vector<7x112xf32>
    %198 = vector.broadcast %194 : vector<1x112xf32> to vector<7x112xf32>
    %199 = arith.addf %197, %198 : vector<7x112xf32>
    %cst_166 = arith.constant 0.000000e+00 : f32
    %200 = vector.broadcast %cst_166 : f32 to vector<7x112xf32>
    %201 = arith.cmpf oge, %199, %200 : vector<7x112xf32>
    %cst_167 = arith.constant 2.000000e-01 : f32
    %202 = vector.broadcast %cst_167 : f32 to vector<7x112xf32>
    %203 = arith.mulf %202, %199 : vector<7x112xf32>
    %204 = arith.select %201, %199, %203 : vector<7x112xi1>, vector<7x112xf32>
    %205 = arith.mulf %204, %195 : vector<7x112xf32>
    %cst_168 = arith.constant dense<0.000000e+00> : vector<7xf32>
    %206 = vector.multi_reduction <add>, %205, %cst_168 [1] : vector<7x112xf32> to vector<7xf32>
    %207 = vector.shape_cast %206 : vector<7xf32> to vector<7x1xf32>
    %cst_169 = arith.constant dense<0.000000e+00> : vector<1xf32>
    %208 = vector.multi_reduction <add>, %207, %cst_169 [0] : vector<7x1xf32> to vector<1xf32>
    %209 = vector.shape_cast %208 : vector<1xf32> to vector<1x1xf32>
    %210 = vector.broadcast %191 : vector<1x112xf32> to vector<7x112xf32>
    %211 = arith.mulf %163, %210 : vector<7x112xf32>
    %212 = vector.broadcast %194 : vector<1x112xf32> to vector<7x112xf32>
    %213 = arith.addf %211, %212 : vector<7x112xf32>
    %cst_170 = arith.constant 0.000000e+00 : f32
    %214 = vector.broadcast %cst_170 : f32 to vector<7x112xf32>
    %215 = arith.cmpf oge, %213, %214 : vector<7x112xf32>
    %cst_171 = arith.constant 2.000000e-01 : f32
    %216 = vector.broadcast %cst_171 : f32 to vector<7x112xf32>
    %217 = arith.mulf %216, %213 : vector<7x112xf32>
    %218 = arith.select %215, %213, %217 : vector<7x112xi1>, vector<7x112xf32>
    %219 = arith.mulf %218, %195 : vector<7x112xf32>
    %cst_172 = arith.constant dense<0.000000e+00> : vector<7xf32>
    %220 = vector.multi_reduction <add>, %219, %cst_172 [1] : vector<7x112xf32> to vector<7xf32>
    %221 = vector.shape_cast %220 : vector<7xf32> to vector<7x1xf32>
    %cst_173 = arith.constant dense<0.000000e+00> : vector<1xf32>
    %222 = vector.multi_reduction <add>, %221, %cst_173 [0] : vector<7x1xf32> to vector<1xf32>
    %223 = vector.shape_cast %222 : vector<1xf32> to vector<1x1xf32>
    %224 = tpu.concatenate %209, %223 in 0 : vector<1x1xf32>, vector<1x1xf32> -> vector<2x1xf32>
    %c0_174 = arith.constant 0 : index
    %c0_175 = arith.constant 0 : index
    %225 = vector.load %arg10[%c0_174, %c0_175] : memref<1x1xf32, #tpu.memory_space<vmem>>, vector<1x1xf32>
    %226 = vector.broadcast %225 : vector<1x1xf32> to vector<2x1xf32>
    %227 = arith.addf %224, %226 : vector<2x1xf32>
    %228 = arith.negf %227 : vector<2x1xf32>
    %229 = math.exp %228 : vector<2x1xf32>
    %cst_176 = arith.constant 1.000000e+00 : f32
    %230 = vector.broadcast %cst_176 : f32 to vector<2x1xf32>
    %231 = arith.addf %230, %229 : vector<2x1xf32>
    %232 = arith.divf %230, %231 : vector<2x1xf32>
    %c0_177 = arith.constant 0 : index
    %c0_178 = arith.constant 0 : index
    %233 = vector.load %arg11[%c0_177, %c0_178] : memref<2x1xf32, #tpu.memory_space<vmem>>, vector<2x1xf32>
    tpu.vector_store %arg11[%c0_177, %c0_178], %232 {strides = array<i32>} : memref<2x1xf32, #tpu.memory_space<vmem>>, vector<2x1xf32>,
    return
  }
}

</mosaic_0001>

<bundles_post_ra>
// kernel: discriminator_forward.1
= control target key start
LH: loop header
LB: loop body
LE: loop exit
PB: predicated region body
PF: predicated region fallthrough
CT: control target
= control target key end

     0   :  { %vm53_vm0 = vcmask 1045504   ;;  %vm46_vm1 = vcmask 244736   ;;  %vm4745_vm2 = vmmov 1   ;;  %v4746_v61 = vmov 0.0|0.0   ;;  %s5572_s0 = inlined_call_operand.vmem [shape: f32[2,30,30], index: 0, kind: input, shape index: {}]   ;;  %s5573_s1 = inlined_call_operand.vmem [shape: f32[4,14,30], index: 1, kind: input, shape index: {}]   ;;  %s5574_s2 = inlined_call_operand.vmem [shape: f32[4,30,128], index: 2, kind: input, shape index: {}]   ;;  %s5575_s3 = inlined_call_operand.vmem [shape: f32[128,128], index: 3, kind: input, shape index: {}]   ;;  %s5576_s4 = inlined_call_operand.vmem [shape: f32[2,128], index: 4, kind: input, shape index: {}]   ;;  %s5577_s6 = inlined_call_operand.vmem [shape: f32[4,128,112], index: 6, kind: input, shape index: {}]   ;;  %s5578_s5 = inlined_call_operand.vmem [shape: f32[4,7,16], index: 5, kind: input, shape index: {}]   ;;  %s5579_s7 = inlined_call_operand.vmem [shape: f32[112,112], index: 7, kind: input, shape index: {}]   ;;  %s5580_s8 = inlined_call_operand.vmem [shape: f32[2,112], index: 8, kind: input, shape index: {}]   ;;  %s5581_s9 = inlined_call_operand.vmem [shape: f32[7,112], index: 9, kind: input, shape index: {}]   ;;  %s5582_s10 = inlined_call_operand.<no memory space> [shape: f32[1,1], index: 10, kind: input, shape index: {}]   ;;  %s5583_s11 = inlined_call_operand.vmem [shape: f32[2,1], index: 11, kind: output, shape index: {}]  }
   0x1   :  { %v40_v0 = vld [vmem:[%s5572_s0] sm:$0xff]  ;;  %v41_v1 = vld [vmem:[%s5572_s0 + $0x8] sm:$0xff]  ;;  %v42_v2 = vld [vmem:[%s5572_s0 + $0x10] sm:$0xff]  ;;  %vm4747_vm4 = vmmov 0   ;;  %vm1606_vm5 = vcmask 1040384   ;;  %vm1613_vm10 = vcmask 1046528  }
   0x2   :  { %v4235_v3 = vpack.c.bf16 %v41_v1, %v40_v0  ;;  %v43_v4 = vld [vmem:[%s5572_s0 + $0x18] sm:$0x3f]  ;;  %v44_v5 = vld [vmem:[%s5573_s1] sm:$0xff]  ;;  %vm4825_vm3 = vmpackc.low %vm53_vm0, %vm4745_vm2  ;;  %vm1635_vm13 = vcmask 130048   ;;  %vm2845_vm14 = vcmask 915456   ;;  %vm2892_vm15 = vcmask 916480  }
   0x3   :  { %v4239_v6 = vpack.c.bf16 %v43_v4, %v42_v2  ;;  %3599 = vmatprep.mubr.msk.f32.mxu0 %vm46_vm1, %v44_v5  ;;  %v3132_v8 = vld [vmem:[%s5573_s1 + $0x20] sm:$0xff]  ;;  %v45_v9 = vld [vmem:[%s5573_s1 + $0x8] sm:$0x3f]  ;;  %v3117_v11 = vld [vmem:[%s5573_s1 + $0x10] sm:$0xff]  ;;  %vm3108_vm2 = vcmask 1024  }
   0x4   :  { %4236 = vmatprep.subr.bf16.mxu0 %v4235_v3  ;;  %4276 = vmatprep.subr.bf16.mxu1 %v4235_v3  ;;  %v3133_v10 = vld [vmem:[%s5573_s1 + $0x28] sm:$0x3f]  ;;  %v3144_v12 = vld [vmem:[%s5573_s1 + $0x30] sm:$0xff]  ;;  %v3156_v13 = vld [vmem:[%s5572_s0 + $0x20] sm:$0xff] }
   0x5   :  { %4238 = vmatpush3.bf16.msra.mxu0 %v4235_v3  ;;  %4278 = vmatpush3.bf16.msra.mxu1 %v4235_v3  ;;  %v3157_v14 = vld [vmem:[%s5572_s0 + $0x28] sm:$0xff]  ;;  %v3158_v16 = vld [vmem:[%s5572_s0 + $0x30] sm:$0xff]  ;;  %v3159_v17 = vld [vmem:[%s5572_s0 + $0x38] sm:$0x3f] }
   0x6   :  { %4241 = vmatprep.subr.msk.bf16.mxu0 %vm4825_vm3, %v4239_v6  ;;  %4281 = vmatprep.subr.msk.bf16.mxu1 %vm4825_vm3, %v4239_v6  ;;  %v4315_v15 = vpack.c.bf16 %v3157_v14, %v3156_v13  ;;  %v3118_v18 = vld [vmem:[%s5573_s1 + $0x18] sm:$0x3f]  ;;  %v4319_v20 = vpack.c.bf16 %v3159_v17, %v3158_v16  ;;  %v3122_v21 = vld [vmem:[%s5574_s2 + $0x20] sm:$0xff]  ;;  %v3123_v22 = vld [vmem:[%s5574_s2 + $0x28] sm:$0xff] }
   0x7   :  { %3643 = vmatprep.mubr.msk.f32.mxu1 %vm46_vm1, %v3132_v8  ;;  %v3145_v19 = vld [vmem:[%s5573_s1 + $0x38] sm:$0x3f]  ;;  %v4255_v23 = vpack.c.bf16 %v3123_v22, %v3122_v21  ;;  %v3124_v24 = vld [vmem:[%s5574_s2 + $0x30] sm:$0xff]  ;;  %v132_v27 = vld [vmem:[%s5574_s2] sm:$0xff]  ;;  %v4748_v22 = vmov 0.0  }
   0x8   :  { %v3125_v25 = vld [vmem:[%s5574_s2 + $0x38] sm:$0x3f]  ;;  %v133_v28 = vld [vmem:[%s5574_s2 + $0x8] sm:$0xff]  ;;  %v134_v34 = vld [vmem:[%s5574_s2 + $0x10] sm:$0xff] }
   0x9   :  { %4244 = vmatpush3.bf16.msk.msra.mxu0 %vm4825_vm3, %v4239_v6  ;;  %4284 = vmatpush3.bf16.msk.msra.mxu1 %vm4825_vm3, %v4239_v6  ;;  %v4259_v26 = vpack.c.bf16 %v3125_v25, %v3124_v24  ;;  %v4265_v29 = vpack.c.bf16 %v133_v28, %v132_v27  ;;  %v135_v35 = vld [vmem:[%s5574_s2 + $0x18] sm:$0x3f]  ;;  %v3137_v40 = vld [vmem:[%s5574_s2 + $0x40] sm:$0xff]  ;;  %v3138_v41 = vld [vmem:[%s5574_s2 + $0x48] sm:$0xff] }
   0xa   :  { %4246 = vmatprep.subr.bf16.mxu0 %v4235_v3  ;;  %4296 = vmatprep.subr.bf16.mxu1 %v4235_v3  ;;  %v4269_v38 = vpack.c.bf16 %v135_v35, %v134_v34  ;;  %v4285_v43 = vpack.c.bf16 %v3138_v41, %v3137_v40  ;;  %v3139_v44 = vld [vmem:[%s5574_s2 + $0x50] sm:$0xff]  ;;  %v3140_v45 = vld [vmem:[%s5574_s2 + $0x58] sm:$0x3f]  ;;  %v3149_v48 = vld [vmem:[%s5574_s2 + $0x60] sm:$0xff] }
   0xb   :  { %v4289_v46 = vpack.c.bf16 %v3140_v45, %v3139_v44  ;;  %v3150_v49 = vld [vmem:[%s5574_s2 + $0x68] sm:$0xff]  ;;  %v3151_v52 = vld [vmem:[%s5574_s2 + $0x70] sm:$0xff]  ;;  %v3152_v53 = vld [vmem:[%s5574_s2 + $0x78] sm:$0x3f] }
   0xc   :  { %3600 = vmatmul.mubr.msk.f32.vlgmr.msra.gmra.mrb[0].mxu0 %vm46_vm1, %v45_v9  ;;  %3644 = vmatmul.mubr.msk.f32.vlgmr.msra.gmra.mrb[0].mxu1 %vm46_vm1, %v3133_v10  ;;  %v4305_v51 = vpack.c.bf16 %v3150_v49, %v3149_v48  ;;  %v4309_v54 = vpack.c.bf16 %v3152_v53, %v3151_v52  ;;  %v1417_v62 = vld [vmem:[%s5575_s3] sm:$0xff]  ;;  %v1418_v63 = vld [vmem:[%s5575_s3 + $0x8] sm:$0xff]  ;;  %v1419_v0 = vld [vmem:[%s5575_s3 + $0x10] sm:$0xff] }
   0xd   :  { %4248 = vmatpush3.bf16.msra.mxu0 %v4235_v3  ;;  %3610 = vmatprep.mubr.msk.f32.mxu0 %vm46_vm1, %v3117_v11  ;;  %v4396_v1 = vpack.c.bf16 %v1418_v63, %v1417_v62  ;;  %v1420_v2 = vld [vmem:[%s5575_s3 + $0x18] sm:$0xff]  ;;  %v1421_v4 = vld [vmem:[%s5575_s3 + $0x20] sm:$0xff]  ;;  %v1423_v7 = vld [vmem:[%s5575_s3 + $0x30] sm:$0xff] }
   0xe   :  { %4251 = vmatprep.subr.msk.bf16.mxu0 %vm4825_vm3, %v4239_v6  ;;  %4298 = vmatpush3.bf16.msra.mxu1 %v4235_v3  ;;  %v4399_v3 = vpack.c.bf16 %v1420_v2, %v1419_v0  ;;  %v1427_v13 = vld [vmem:[%s5575_s3 + $0x50] sm:$0xff]  ;;  %v1428_v14 = vld [vmem:[%s5575_s3 + $0x58] sm:$0xff]  ;;  %v1429_v16 = vld [vmem:[%s5575_s3 + $0x60] sm:$0xff] }
   0xf   :  { %4301 = vmatprep.subr.msk.bf16.mxu1 %vm4825_vm3, %v4239_v6  ;;  %3665 = vmatprep.mubr.msk.f32.mxu1 %vm46_vm1, %v3144_v12  ;;  %v1430_v17 = vld [vmem:[%s5575_s3 + $0x68] sm:$0xff]  ;;  %vm3184_vm11 = vmneg %vm1606_vm5 }
  0x10   :  { %vm5110_vm12 = vmpackc.low %vm1613_vm10, %vm3184_vm11 }
  0x11   :  { %4254 = vmatpush3.bf16.msk.msra.mxu0 %vm4825_vm3, %v4239_v6 }
  0x12   :  { %4304 = vmatpush3.bf16.msk.msra.mxu1 %vm4825_vm3, %v4239_v6  ;;  %4256 = vmatprep.subr.bf16.mxu0 %v4255_v23 }
  0x13   :  { %4316 = vmatprep.subr.bf16.mxu1 %v4315_v15 }
  0x14   :  { %3611 = vmatmul.mubr.msk.f32.vlgmr.msra.gmra.mrb[2].mxu0 %vm46_vm1, %v3118_v18 }
  0x15   :  { %3666 = vmatmul.mubr.msk.f32.vlgmr.msra.gmra.mrb[2].mxu1 %vm46_vm1, %v3145_v19  ;;  %4258 = vmatpush3.bf16.msra.mxu0 %v4255_v23 }
  0x16   :  { %4318 = vmatpush3.bf16.msra.mxu1 %v4315_v15  ;;  %3687 = vmatprep.mubr.msk.f32.mxu1 %vm46_vm1, %v44_v5  ;;  %v1422_v5 = vld [vmem:[%s5575_s3 + $0x28] sm:$0xff] }
  0x17   :  { %4321 = vmatprep.subr.msk.bf16.mxu1 %vm4825_vm3, %v4319_v20  ;;  %4261 = vmatprep.subr.msk.bf16.mxu0 %vm4825_vm3, %v4259_v26  ;;  %v4402_v6 = vpack.c.bf16 %v1422_v5, %v1421_v4 }
  0x19   :  { %4264 = vmatpush3.bf16.msk.msra.mxu0 %vm4825_vm3, %v4259_v26 }
  0x1a   :  { %4324 = vmatpush3.bf16.msk.msra.mxu1 %vm4825_vm3, %v4319_v20  ;;  %4266 = vmatprep.subr.bf16.mxu0 %v4265_v29 }
  0x1b   :  { %4326 = vmatprep.subr.bf16.mxu1 %v4315_v15 }
  0x1d   :  { %3688 = vmatmul.mubr.msk.f32.vlgmr.msra.gmra.mrb[4].mxu1 %vm46_vm1, %v45_v9 }
  0x1e   :  { %4328 = vmatpush3.bf16.msra.mxu1 %v4315_v15  ;;  %3698 = vmatprep.mubr.msk.f32.mxu1 %vm46_vm1, %v3117_v11  ;;  %v1426_v11 = vld [vmem:[%s5575_s3 + $0x48] sm:$0xff] }
  0x1f   :  { %4331 = vmatprep.subr.msk.bf16.mxu1 %vm4825_vm3, %v4319_v20 }
  0x22   :  { %4334 = vmatpush3.bf16.msk.msra.mxu1 %vm4825_vm3, %v4319_v20 }
  0x23   :  { %4356 = vmatprep.subr.bf16.mxu1 %v4315_v15 }
  0x25   :  { %3699 = vmatmul.mubr.msk.f32.vlgmr.msra.gmra.mrb[6].mxu1 %vm46_vm1, %v3118_v18  ;;  %v4414_v18 = vpack.c.bf16 %v1430_v17, %v1429_v16 }
  0x26   :  { %4358 = vmatpush3.bf16.msra.mxu1 %v4315_v15  ;;  %3731 = vmatprep.mubr.msk.f32.mxu1 %vm46_vm1, %v3132_v8  ;;  %v1424_v8 = vld [vmem:[%s5575_s3 + $0x38] sm:$0xff] }
  0x27   :  { %4361 = vmatprep.subr.msk.bf16.mxu1 %vm4825_vm3, %v4319_v20  ;;  %v4405_v9 = vpack.c.bf16 %v1424_v8, %v1423_v7 }
  0x2a   :  { %4364 = vmatpush3.bf16.msk.msra.mxu1 %vm4825_vm3, %v4319_v20 }
  0x2b   :  { %4376 = vmatprep.subr.bf16.mxu1 %v4315_v15 }
  0x2d   :  { %3732 = vmatmul.mubr.msk.f32.vlgmr.msra.gmra.mrb[8].mxu1 %vm46_vm1, %v3133_v10  ;;  %v1425_v10 = vld [vmem:[%s5575_s3 + $0x40] sm:$0xff] }
  0x2e   :  { %4378 = vmatpush3.bf16.msra.mxu1 %v4315_v15  ;;  %3753 = vmatprep.mubr.msk.f32.mxu1 %vm46_vm1, %v3144_v12  ;;  %v4408_v12 = vpack.c.bf16 %v1426_v11, %v1425_v10  ;;  %v4411_v15 = vpack.c.bf16 %v1428_v14, %v1427_v13  ;;  %v1586_v11 = vlaneseq  ;;  %v1577_v13 = vld [vmem:[%s5576_s4] sm:$0x3] }
  0x2f   :  { %4381 = vmatprep.subr.msk.bf16.mxu1 %vm4825_vm3, %v4319_v20 }
  0x32   :  { %4384 = vmatpush3.bf16.msk.msra.mxu1 %vm4825_vm3, %v4319_v20  ;;  %v1432_v20 = vld [vmem:[%s5575_s3 + $0x78] sm:$0xff] }
  0x33   :  { %4395 = vmatprep.subr.bf16.mxu1 %v4746_v61 }
  0x35   :  { %3754 = vmatmul.mubr.msk.f32.vlgmr.msra.gmra.mrb[10].mxu1 %vm46_vm1, %v3145_v19  ;;  %v1431_v19 = vld [vmem:[%s5575_s3 + $0x70] sm:$0xff] }
  0x36   :  { %4397 = vmatpush3.bf16.msra.mxu1 %v4396_v1  ;;  %v4417_v21 = vpack.c.bf16 %v1432_v20, %v1431_v19  ;;  %3799 = vmatprep.mubr.msk.f32.mxu1 %vm4747_vm4, %v4748_v22 }
  0x37   :  { %4398 = vmatprep.subr.bf16.mxu1 %v4746_v61 }
  0x3a   :  { %4400 = vmatpush3.bf16.msra.mxu1 %v4399_v3 }
  0x3b   :  { %4401 = vmatprep.subr.bf16.mxu1 %v4746_v61 }
  0x3e   :  { %4403 = vmatpush3.bf16.msra.mxu1 %v4402_v6 }
  0x3f   :  { %4404 = vmatprep.subr.bf16.mxu1 %v4746_v61 }
  0x42   :  { %4406 = vmatpush3.bf16.msra.mxu1 %v4405_v9 }
  0x43   :  { %4407 = vmatprep.subr.bf16.mxu1 %v4746_v61 }
  0x46   :  { %4409 = vmatpush3.bf16.msra.mxu1 %v4408_v12 }
  0x47   :  { %4410 = vmatprep.subr.bf16.mxu1 %v4746_v61 }
  0x4a   :  { %4412 = vmatpush3.bf16.msra.mxu1 %v4411_v15 }
  0x4b   :  { %4413 = vmatprep.subr.bf16.mxu1 %v4746_v61 }
  0x4e   :  { %4415 = vmatpush3.bf16.msra.mxu1 %v4414_v18 }
  0x4f   :  { %4416 = vmatprep.subr.bf16.mxu1 %v4746_v61 }
  0x52   :  { %4418 = vmatpush3.bf16.msra.mxu1 %v4417_v21 }
  0x53   :  { %4447 = vmatprep.subr.bf16.mxu1 %v4746_v61 }
  0xdf   :  { %v3601_v30 = vpop.f32.mrb[0].mxu0  ;;  %v3645_v31 = vpop.f32.mrb[0].mxu1 }
  0xe0   :  { %v123_v32 = vpop.f32.mrb[1].mxu0  ;;  %v468_v33 = vpop.f32.mrb[1].mxu1 }
  0xe7   :  { %v3612_v36 = vpop.f32.mrb[2].mxu0 }
  0xe8   :  { %v211_v37 = vpop.f32.mrb[3].mxu0  ;;  %v3667_v39 = vpop.f32.mrb[2].mxu1 }
  0xe9   :  { %3621 = vmatprep.mubr.msk.f32.mxu0 %vm46_vm1, %v211_v37  ;;  %v643_v42 = vpop.f32.mrb[3].mxu1 }
  0xea   :  { %3622 = vmatmul.mubr.msk.f32.vlgmr.msra.gmra.mrb[4].mxu0 %vm46_vm1, %v3612_v36 }
  0xeb   :  { %4268 = vmatpush3.bf16.msra.mxu0 %v4265_v29  ;;  %3632 = vmatprep.mubr.msk.f32.mxu0 %vm46_vm1, %v123_v32 }
  0xec   :  { %4271 = vmatprep.subr.msk.bf16.mxu0 %vm4825_vm3, %v4269_v38 }
  0xef   :  { %4274 = vmatpush3.bf16.msk.msra.mxu0 %vm4825_vm3, %v4269_v38 }
  0xf0   :  { %4286 = vmatprep.subr.bf16.mxu0 %v4285_v43  ;;  %v3689_v47 = vpop.f32.mrb[4].mxu1 }
  0xf1   :  { %v817_v50 = vpop.f32.mrb[5].mxu1 }
  0xf2   :  { %3633 = vmatmul.mubr.msk.f32.vlgmr.msra.gmra.mrb[4].mxu0 %vm46_vm1, %v3601_v30 }
  0xf3   :  { %4288 = vmatpush3.bf16.msra.mxu0 %v4285_v43  ;;  %3654 = vmatprep.mubr.msk.f32.mxu0 %vm46_vm1, %v468_v33 }
  0xf4   :  { %4291 = vmatprep.subr.msk.bf16.mxu0 %vm4825_vm3, %v4289_v46 }
  0xf7   :  { %4294 = vmatpush3.bf16.msk.msra.mxu0 %vm4825_vm3, %v4289_v46 }
  0xf8   :  { %4306 = vmatprep.subr.bf16.mxu0 %v4305_v51  ;;  %v3700_v55 = vpop.f32.mrb[6].mxu1 }
  0xf9   :  { %v892_v56 = vpop.f32.mrb[7].mxu1 }
  0xfa   :  { %3655 = vmatmul.mubr.msk.f32.vlgmr.msra.gmra.mrb[4].mxu0 %vm46_vm1, %v3645_v31 }
  0xfb   :  { %4308 = vmatpush3.bf16.msra.mxu0 %v4305_v51  ;;  %3676 = vmatprep.mubr.msk.f32.mxu0 %vm46_vm1, %v643_v42 }
  0xfc   :  { %4311 = vmatprep.subr.msk.bf16.mxu0 %vm4825_vm3, %v4309_v54 }
  0xff   :  { %4314 = vmatpush3.bf16.msk.msra.mxu0 %vm4825_vm3, %v4309_v54 }
 0x100   :  { %4336 = vmatprep.subr.bf16.mxu0 %v4255_v23  ;;  %v3733_v57 = vpop.f32.mrb[8].mxu1 }
 0x101   :  { %v1129_v58 = vpop.f32.mrb[9].mxu1 }
 0x102   :  { %3677 = vmatmul.mubr.msk.f32.vlgmr.msra.gmra.mrb[4].mxu0 %vm46_vm1, %v3667_v39 }
 0x103   :  { %4338 = vmatpush3.bf16.msra.mxu0 %v4255_v23  ;;  %3709 = vmatprep.mubr.msk.f32.mxu0 %vm46_vm1, %v892_v56 }
 0x104   :  { %4341 = vmatprep.subr.msk.bf16.mxu0 %vm4825_vm3, %v4259_v26 }
 0x107   :  { %4344 = vmatpush3.bf16.msk.msra.mxu0 %vm4825_vm3, %v4259_v26 }
 0x108   :  { %4346 = vmatprep.subr.bf16.mxu0 %v4265_v29  ;;  %v3755_v59 = vpop.f32.mrb[10].mxu1 }
 0x109   :  { %v1287_v60 = vpop.f32.mrb[11].mxu1 }
 0x10a   :  { %3710 = vmatmul.mubr.msk.f32.vlgmr.msra.gmra.mrb[6].mxu0 %vm46_vm1, %v3700_v55 }
 0x10b   :  { %4348 = vmatpush3.bf16.msra.mxu0 %v4265_v29  ;;  %3720 = vmatprep.mubr.msk.f32.mxu0 %vm46_vm1, %v817_v50 }
 0x10c   :  { %4351 = vmatprep.subr.msk.bf16.mxu0 %vm4825_vm3, %v4269_v38 }
 0x10f   :  { %4354 = vmatpush3.bf16.msk.msra.mxu0 %vm4825_vm3, %v4269_v38 }
 0x110   :  { %4366 = vmatprep.subr.bf16.mxu0 %v4285_v43 }
 0x112   :  { %3721 = vmatmul.mubr.msk.f32.vlgmr.msra.gmra.mrb[6].mxu0 %vm46_vm1, %v3689_v47 }
 0x113   :  { %4368 = vmatpush3.bf16.msra.mxu0 %v4285_v43  ;;  %3742 = vmatprep.mubr.msk.f32.mxu0 %vm46_vm1, %v1129_v58 }
 0x114   :  { %4371 = vmatprep.subr.msk.bf16.mxu0 %vm4825_vm3, %v4289_v46 }
 0x117   :  { %4374 = vmatpush3.bf16.msk.msra.mxu0 %vm4825_vm3, %v4289_v46 }
 0x118   :  { %4386 = vmatprep.subr.bf16.mxu0 %v4305_v51 }
 0x11a   :  { %3743 = vmatmul.mubr.msk.f32.vlgmr.msra.gmra.mrb[6].mxu0 %vm46_vm1, %v3733_v57 }
 0x11b   :  { %4388 = vmatpush3.bf16.msra.mxu0 %v4305_v51  ;;  %3764 = vmatprep.mubr.msk.f32.mxu0 %vm46_vm1, %v1287_v60 }
 0x11c   :  { %4391 = vmatprep.subr.msk.bf16.mxu0 %vm4825_vm3, %v4309_v54 }
 0x11f   :  { %4394 = vmatpush3.bf16.msk.msra.mxu0 %vm4825_vm3, %v4309_v54 }
 0x120   :  { %4419 = vmatprep.subr.bf16.mxu0 %v4746_v61 }
 0x122   :  { %3765 = vmatmul.mubr.msk.f32.vlgmr.msra.gmra.mrb[6].mxu0 %vm46_vm1, %v3755_v59 }
 0x123   :  { %4421 = vmatpush3.bf16.msra.mxu0 %v4396_v1  ;;  %3834 = vmatprep.mubr.msk.f32.mxu0 %vm4747_vm4, %v4748_v22 }
 0x124   :  { %4422 = vmatprep.subr.bf16.mxu0 %v4746_v61 }
 0x127   :  { %4424 = vmatpush3.bf16.msra.mxu0 %v4399_v3 }
 0x128   :  { %4425 = vmatprep.subr.bf16.mxu0 %v4746_v61 }
 0x12b   :  { %4427 = vmatpush3.bf16.msra.mxu0 %v4402_v6 }
 0x12c   :  { %4428 = vmatprep.subr.bf16.mxu0 %v4746_v61 }
 0x12f   :  { %4430 = vmatpush3.bf16.msra.mxu0 %v4405_v9 }
 0x130   :  { %4431 = vmatprep.subr.bf16.mxu0 %v4746_v61 }
 0x133   :  { %4433 = vmatpush3.bf16.msra.mxu0 %v4408_v12  ;;  %v5094_v12 = vshrl.u32 %v1586_v11, 7  ;;  %v3207_v11 = vld [vmem:[%s5577_s6 + $0xf0] sm:$0xff] }
 0x134   :  { %4434 = vmatprep.subr.bf16.mxu0 %v4746_v61 }
 0x135   :  { %v1588_v14 = vsub.s32 0, %v5094_v12  ;;  %v1594_v19 = vsub.s32 1, %v5094_v12 }
 0x137   :  { %4436 = vmatpush3.bf16.msra.mxu0 %v4411_v15 }
 0x138   :  { %4437 = vmatprep.subr.bf16.mxu0 %v4746_v61 }
 0x13b   :  { %4439 = vmatpush3.bf16.msra.mxu0 %v4414_v18 }
 0x13c   :  { %4440 = vmatprep.subr.bf16.mxu0 %v4746_v61 }
 0x13f   :  { %4442 = vmatpush3.bf16.msra.mxu0 %v4417_v21 }
 0x140   :  { %4443 = vmatprep.subr.bf16.mxu0 %v4746_v61 }
 0x1d5   :  { %v5076_v23 = vpop.f32.mrb[4].mxu0 }
 0x1d6   :  { %v1379_v24 = vsel %vm53_vm0, %v5076_v23, 0.0  ;;  %v1388_v25 = vmul.f32 %v5076_v23, %v5076_v23  ;;  %v5082_v26 = vpop.f32.mrb[5].mxu0 }
 0x1d7   :  { %v1380_v27 = vadd.f32 %v1379_v24, %v5082_v26  ;;  %v1387_v28 = vmul.f32 %v5082_v26, %v5082_v26 }
 0x1d8   :  { %v1389_v29 = vsel %vm53_vm0, %v1388_v25, 0.0 }
 0x1d9   :  { %v1390_v30 = vadd.f32 %v1389_v29, %v1387_v28  ;;  %v1381_v31 = vrot.slane %v1380_v27, 4 }
 0x1db   :  { %v1391_v32 = vrot.slane %v1390_v30, 4  ;;  %v1382_v33 = vadd.f32 %v1381_v31, %v1380_v27 }
 0x1dd   :  { %v1392_v34 = vadd.f32 %v1391_v32, %v1390_v30  ;;  %v1383_v39 = vrot.slane %v1382_v33, 2 }
 0x1df   :  { %v1393_v43 = vrot.slane %v1392_v34, 2  ;;  %v1384_v46 = vadd.f32 %v1383_v39, %v1382_v33 }
 0x1e1   :  { %v1394_v49 = vadd.f32 %v1393_v43, %v1392_v34  ;;  %v1385_v52 = vrot.slane %v1384_v46, 1 }
 0x1e3   :  { %v1395_v57 = vrot.slane %v1394_v49, 1  ;;  %v1386_v58 = vadd.f32 %v1385_v52, %v1384_v46  ;;  %v3188_v52 = vld [vmem:[%s5578_s5 + $0x8] sm:$0x7f] }
 0x1e5   :  { %v1396_v63 = vadd.f32 %v1395_v57, %v1394_v49  ;;  %v3194_v49 = vld [vmem:[%s5577_s6 + $0x88] sm:$0xff] }
 0x1f5   :  { %v3766_v35 = vpop.f32.mrb[6].mxu0 }
 0x1f6   :  { %v1397_v36 = vsel %vm53_vm0, %v3766_v35, 0.0  ;;  %v1406_v37 = vmul.f32 %v3766_v35, %v3766_v35  ;;  %v1368_v38 = vpop.f32.mrb[7].mxu0 }
 0x1f7   :  { %v1398_v40 = vadd.f32 %v1397_v36, %v1368_v38  ;;  %v1405_v41 = vmul.f32 %v1368_v38, %v1368_v38 }
 0x1f8   :  { %v1407_v42 = vsel %vm53_vm0, %v1406_v37, 0.0 }
 0x1f9   :  { %v1399_v44 = vrot.slane %v1398_v40, 4  ;;  %v1408_v45 = vadd.f32 %v1407_v42, %v1405_v41 }
 0x1fb   :  { %v1400_v47 = vadd.f32 %v1399_v44, %v1398_v40  ;;  %v1409_v48 = vrot.slane %v1408_v45, 4 }
 0x1fd   :  { %v1401_v50 = vrot.slane %v1400_v47, 2  ;;  %v1410_v51 = vadd.f32 %v1409_v48, %v1408_v45  ;;  %v3193_v48 = vld [vmem:[%s5577_s6 + $0x80] sm:$0xff] }
 0x1ff   :  { %v1402_v53 = vadd.f32 %v1401_v50, %v1400_v47  ;;  %v1411_v54 = vrot.slane %v1410_v51, 2 }
 0x201   :  { %v1403_v55 = vrot.slane %v1402_v53, 1  ;;  %v1412_v56 = vadd.f32 %v1411_v54, %v1410_v51  ;;  %v1634_v51 = vld [vmem:[%s5578_s5] sm:$0x7f]  ;;  %v3195_v54 = vld [vmem:[%s5577_s6 + $0x90] sm:$0xff] }
 0x203   :  { %v1404_v59 = vadd.f32 %v1403_v55, %v1402_v53  ;;  %v1413_v60 = vrot.slane %v1412_v56, 1  ;;  %v4452_v53 = vpack.c.bf16 %v3194_v49, %v3193_v48  ;;  %v3196_v55 = vld [vmem:[%s5577_s6 + $0x98] sm:$0xff]  ;;  %v1721_v49 = vld [vmem:[%s5577_s6 + $0x60] sm:$0xff] }
 0x204   :  { %v4455_v57 = vpack.c.bf16 %v3196_v55, %v3195_v54  ;;  %v1724_v54 = vld [vmem:[%s5577_s6 + $0x78] sm:$0xff] }
 0x205   :  { %v1415_v62 = vadd.f32 %v1404_v59, %v1386_v58  ;;  %v1414_v0 = vadd.f32 %v1413_v60, %v1412_v56  ;;  %v5150_v56 = vld [vmem:[%s5578_s5 + $0x10] sm:$0x7f]  ;;  %v3197_v58 = vld [vmem:[%s5577_s6 + $0xa0] sm:$0xff]  ;;  %v3198_v59 = vld [vmem:[%s5577_s6 + $0xa8] sm:$0xff] }
 0x206   :  { %v5171_v60 = vld [vmem:[%s5578_s5 + $0x18] sm:$0x7f] }
 0x207   :  { %3800 = vmatmul.mubr.f32.vlgmr.msra.gmra.mrb[12].mxu1 %v1415_v62  ;;  %v1416_v1 = vadd.f32 %v1414_v0, %v1396_v63  ;;  %v4458_v62 = vpack.c.bf16 %v3198_v59, %v3197_v58  ;;  %v3199_v63 = vld [vmem:[%s5577_s6 + $0xb0] sm:$0xff]  ;;  %v3200_v0 = vld [vmem:[%s5577_s6 + $0xb8] sm:$0xff]  ;;  %v3215_v58 = vld [vmem:[%s5577_s6 + $0x108] sm:$0xff] }
 0x208   :  { %3848 = vmatprep.mubr.msk.f32.mxu1 %vm4747_vm4, %v4748_v22 }
 0x209   :  { %3835 = vmatmul.mubr.f32.vlgmr.msra.gmra.mrb[8].mxu0 %v1416_v1  ;;  %v4461_v1 = vpack.c.bf16 %v3200_v0, %v3199_v63  ;;  %v3217_v63 = vld [vmem:[%s5577_s6 + $0x118] sm:$0xff] }
 0x20a   :  { %3841 = vmatprep.mubr.msk.f32.mxu0 %vm4747_vm4, %v4748_v22 }
 0x2da   :  { %v1499_v2 = vpop.f32.mrb[12].mxu1 }
 0x2db   :  { %v1503_v3 = vmul.f32 0.0025510204, %v1499_v2  ;;  %v3801_v4 = vpop.f32.mrb[13].mxu1  ;;  %v3201_v2 = vld [vmem:[%s5577_s6 + $0xc0] sm:$0xff] }
 0x2dc   :  { %v1570_v5 = vpop.f32.mrb[8].mxu0 }
 0x2dd   :  { %v1575_v6 = vmul.f32 %v1503_v3, %v1503_v3  ;;  %v1574_v7 = vmul.f32 0.0025510204, %v1570_v5  ;;  %v3836_v8 = vpop.f32.mrb[9].mxu0  ;;  %v3203_v5 = vld [vmem:[%s5577_s6 + $0xd0] sm:$0xff] }
 0x2de   :  { %v3205_v8 = vld [vmem:[%s5577_s6 + $0xe0] sm:$0xff] }
 0x2df   :  { %v1576_v9 = vsub.f32 %v1574_v7, %v1575_v6  ;;  %v3204_v6 = vld [vmem:[%s5577_s6 + $0xd8] sm:$0xff] }
 0x2e0   :  { %v4467_v7 = vpack.c.bf16 %v3204_v6, %v3203_v5  ;;  %v3221_v5 = vld [vmem:[%s5577_s6 + $0x138] sm:$0xff] }
 0x2e1   :  { %v1578_v10 = vadd.f32 1e-05, %v1576_v9  ;;  %v3206_v9 = vld [vmem:[%s5577_s6 + $0xe8] sm:$0xff] }
 0x2e3   :  { %4737 = vrsqrt.f32 %v1578_v10  ;;  %v4470_v10 = vpack.c.bf16 %v3206_v9, %v3205_v8  ;;  %v3223_v8 = vld [vmem:[%s5577_s6 + $0x148] sm:$0xff] }
 0x2ed   :  { %v4738_v15 = vpop.eup %4737 }
 0x2ee   :  { %v1580_v16 = vmul.f32 %v4738_v15, %v1577_v13 }
 0x2f0   :  { %v1581_v17 = vmul.f32 %v1580_v16, %v1503_v3  ;;  %v1589_v18 = vrot.slane %v1580_v16, %v1588_v14  ;;  %v3202_v3 = vld [vmem:[%s5577_s6 + $0xc8] sm:$0xff]  ;;  %v1709_v16 = vld [vmem:[%s5577_s6] sm:$0xff] }
 0x2f1   :  { %v4464_v4 = vpack.c.bf16 %v3202_v3, %v3201_v2  ;;  %v3219_v2 = vld [vmem:[%s5577_s6 + $0x128] sm:$0xff] }
 0x2f2   :  { %v1583_v20 = vrot.slane %v1581_v17, 7  ;;  %v1590_v21 = vmul.f32 %v1589_v18, %v5082_v26  ;;  %v1591_v24 = vmul.f32 %v5076_v23, %v1589_v18  ;;  %v1615_v25 = vmul.f32 %v1589_v18, %v1368_v38  ;;  %v1710_v17 = vld [vmem:[%s5577_s6 + $0x8] sm:$0xff] }
 0x2f3   :  { %v1616_v27 = vmul.f32 %v3766_v35, %v1589_v18  ;;  %v4476_v18 = vpack.c.bf16 %v1710_v17, %v1709_v16  ;;  %v3227_v16 = vld [vmem:[%s5577_s6 + $0x168] sm:$0xff] }
 0x2f4   :  { %v1585_v28 = vsub.f32 %v1577_v13, %v1583_v20  ;;  %v3208_v13 = vld [vmem:[%s5577_s6 + $0xf8] sm:$0xff]  ;;  %v1711_v20 = vld [vmem:[%s5577_s6 + $0x10] sm:$0xff] }
 0x2f5   :  { %v4473_v15 = vpack.c.bf16 %v3208_v13, %v3207_v11  ;;  %v3225_v11 = vld [vmem:[%s5577_s6 + $0x158] sm:$0xff] }
 0x2f6   :  { %v1595_v29 = vrot.slane %v1585_v28, %v1594_v19 }
 0x2f8   :  { %v1596_v30 = vadd.f32 %v1595_v29, %v1590_v21  ;;  %v1597_v31 = vadd.f32 %v1595_v29, %v1591_v24  ;;  %v1617_v32 = vadd.f32 %v1615_v25, %v1595_v29  ;;  %v1618_v33 = vadd.f32 %v1616_v27, %v1595_v29  ;;  %v1712_v21 = vld [vmem:[%s5577_s6 + $0x18] sm:$0xff] }
 0x2f9   :  { %v4479_v29 = vpack.c.bf16 %v1712_v21, %v1711_v20  ;;  %v3229_v20 = vld [vmem:[%s5577_s6 + $0x178] sm:$0xff]  ;;  %v3235_v21 = vld [vmem:[%s5577_s6 + $0x180] sm:$0xff] }
 0x2fa   :  { %vm1598_vm6 = vcmp.ge.f32.partialorder %v1596_v30, 0.0  ;;  %vm1599_vm7 = vcmp.ge.f32.partialorder %v1597_v31, 0.0  ;;  %v1600_v34 = vmul.f32 0.2, %v1596_v30  ;;  %v1601_v36 = vmul.f32 0.2, %v1597_v31 }
 0x2fb   :  { %vm1619_vm8 = vcmp.ge.f32.partialorder %v1617_v32, 0.0  ;;  %vm1620_vm9 = vcmp.ge.f32.partialorder %v1618_v33, 0.0  ;;  %v1621_v26 = vmul.f32 0.2, %v1617_v32  ;;  %v1622_v37 = vmul.f32 0.2, %v1618_v33 }
 0x2fc   :  { %v1602_v23 = vsel %vm1598_vm6, %v1596_v30, %v1600_v34  ;;  %v1603_v38 = vsel %vm1599_vm7, %v1597_v31, %v1601_v36  ;;  %v1713_v30 = vld [vmem:[%s5577_s6 + $0x20] sm:$0xff]  ;;  %v1714_v31 = vld [vmem:[%s5577_s6 + $0x28] sm:$0xff]  ;;  %v1715_v36 = vld [vmem:[%s5577_s6 + $0x30] sm:$0xff] }
 0x2fd   :  { %v1607_v35 = vrot.slane %v1602_v23, 7  ;;  %v1608_v39 = vrot.slane %v1603_v38, 7  ;;  %v1623_v40 = vsel %vm1619_vm8, %v1617_v32, %v1621_v26  ;;  %v1624_v41 = vsel %vm1620_vm9, %v1618_v33, %v1622_v37  ;;  %v1716_v26 = vld [vmem:[%s5577_s6 + $0x38] sm:$0xff] }
 0x2fe   :  { %v1627_v42 = vrot.slane %v1623_v40, 7  ;;  %v1628_v43 = vrot.slane %v1624_v41, 7  ;;  %v4482_v34 = vpack.c.bf16 %v1714_v31, %v1713_v30  ;;  %v4485_v38 = vpack.c.bf16 %v1716_v26, %v1715_v36  ;;  %v3239_v30 = vld [vmem:[%s5577_s6 + $0x1a0] sm:$0xff]  ;;  %v3240_v31 = vld [vmem:[%s5577_s6 + $0x1a8] sm:$0xff] }
 0x2ff   :  { %v1609_v44 = vsel %vm1606_vm5, %v1607_v35, %v1608_v39  ;;  %v1718_v39 = vld [vmem:[%s5577_s6 + $0x48] sm:$0xff]  ;;  %v3243_v26 = vld [vmem:[%s5577_s6 + $0x1c0] sm:$0xff] }
 0x300   :  { %v4444_v46 = vpack.c.bf16 %v1609_v44, %v1607_v35  ;;  %v1629_v47 = vsel %vm1606_vm5, %v1627_v42, %v1628_v43  ;;  %v1717_v35 = vld [vmem:[%s5577_s6 + $0x40] sm:$0xff]  ;;  %v1719_v43 = vld [vmem:[%s5577_s6 + $0x50] sm:$0xff]  ;;  %v1720_v44 = vld [vmem:[%s5577_s6 + $0x58] sm:$0xff] }
 0x301   :  { %v5121_v50 = vpack.c.bf16 %v1629_v47, %v1627_v42  ;;  %v4488_v42 = vpack.c.bf16 %v1718_v39, %v1717_v35  ;;  %v4491_v48 = vpack.c.bf16 %v1720_v44, %v1719_v43  ;;  %v3245_v35 = vld [vmem:[%s5577_s6 + $0x1d0] sm:$0xff]  ;;  %v3246_v39 = vld [vmem:[%s5577_s6 + $0x1d8] sm:$0xff] }
 0x302   :  { %4446 = vmatpush3.bf16.msk.msra.mxu0 %vm5110_vm12, %v4444_v46  ;;  %4450 = vmatpush3.bf16.msk.msra.mxu1 %vm5110_vm12, %v4444_v46  ;;  %v3249_v44 = vld [vmem:[%s5577_s6 + $0x1f0] sm:$0xff] }
 0x303   :  { %4499 = vmatprep.subr.bf16.mxu0 %v4746_v61  ;;  %4451 = vmatprep.subr.bf16.mxu1 %v4746_v61 }
 0x305   :  { %3842 = vmatmul.mubr.msk.f32.vlgmr.msra.gmra.mrb[10].mxu0 %vm1635_vm13, %v1634_v51  ;;  %3849 = vmatmul.mubr.msk.f32.vlgmr.msra.gmra.mrb[14].mxu1 %vm1635_vm13, %v3188_v52 }
 0x306   :  { %4502 = vmatpush3.bf16.msk.msra.mxu0 %vm5110_vm12, %v4444_v46  ;;  %3925 = vmatprep.mubr.msk.f32.mxu0 %vm4747_vm4, %v4748_v22 }
 0x307   :  { %4527 = vmatprep.subr.bf16.mxu0 %v4746_v61  ;;  %4453 = vmatpush3.bf16.msra.mxu1 %v4452_v53 }
 0x308   :  { %4454 = vmatprep.subr.bf16.mxu1 %v4746_v61  ;;  %3883 = vmatprep.mubr.msk.f32.mxu1 %vm4747_vm4, %v4748_v22 }
 0x309   :  { %3926 = vmatmul.mubr.msk.f32.vlgmr.msra.gmra.mrb[12].mxu0 %vm1635_vm13, %v5150_v56 }
 0x30a   :  { %4530 = vmatpush3.bf16.msk.msra.mxu0 %vm5110_vm12, %v4444_v46  ;;  %3967 = vmatprep.mubr.msk.f32.mxu0 %vm4747_vm4, %v4748_v22 }
 0x30b   :  { %4555 = vmatprep.subr.bf16.mxu0 %v4746_v61  ;;  %4456 = vmatpush3.bf16.msra.mxu1 %v4455_v57 }
 0x30c   :  { %4457 = vmatprep.subr.bf16.mxu1 %v4746_v61 }
 0x30d   :  { %3968 = vmatmul.mubr.msk.f32.vlgmr.msra.gmra.mrb[14].mxu0 %vm1635_vm13, %v5171_v60 }
 0x30e   :  { %4558 = vmatpush3.bf16.msk.msra.mxu0 %vm5110_vm12, %v5121_v50  ;;  %4009 = vmatprep.mubr.msk.f32.mxu0 %vm4747_vm4, %v4748_v22 }
 0x30f   :  { %4559 = vmatprep.subr.bf16.mxu0 %v4746_v61  ;;  %4459 = vmatpush3.bf16.msra.mxu1 %v4458_v62 }
 0x310   :  { %4460 = vmatprep.subr.bf16.mxu1 %v4746_v61 }
 0x311   :  { %4010 = vmatmul.mubr.msk.f32.vlgmr.msra.gmra.mrb[16].mxu0 %vm1635_vm13, %v1634_v51  ;;  %v1722_v51 = vld [vmem:[%s5577_s6 + $0x68] sm:$0xff] }
 0x312   :  { %4562 = vmatpush3.bf16.msk.msra.mxu0 %vm5110_vm12, %v5121_v50  ;;  %4016 = vmatprep.mubr.msk.f32.mxu0 %vm4747_vm4, %v4748_v22 }
 0x313   :  { %4462 = vmatpush3.bf16.msra.mxu1 %v4461_v1  ;;  %4563 = vmatprep.subr.bf16.mxu0 %v4746_v61 }
 0x314   :  { %4463 = vmatprep.subr.bf16.mxu1 %v4746_v61 }
 0x315   :  { %4017 = vmatmul.mubr.msk.f32.vlgmr.msra.gmra.mrb[18].mxu0 %vm1635_vm13, %v3188_v52  ;;  %v4494_v52 = vpack.c.bf16 %v1722_v51, %v1721_v49  ;;  %v2880_v51 = vld [vmem:[%s5579_s7 + $0x10] sm:$0xff] }
 0x316   :  { %4565 = vmatpush3.bf16.msra.mxu0 %v4452_v53  ;;  %4051 = vmatprep.mubr.msk.f32.mxu0 %vm4747_vm4, %v4748_v22  ;;  %v1723_v53 = vld [vmem:[%s5577_s6 + $0x70] sm:$0xff] }
 0x317   :  { %4465 = vmatpush3.bf16.msra.mxu1 %v4464_v4  ;;  %4566 = vmatprep.subr.bf16.mxu0 %v4746_v61  ;;  %v4497_v55 = vpack.c.bf16 %v1724_v54, %v1723_v53  ;;  %v2881_v53 = vld [vmem:[%s5579_s7 + $0x18] sm:$0xff] }
 0x318   :  { %4466 = vmatprep.subr.bf16.mxu1 %v4746_v61  ;;  %v5487_v54 = vpack.c.bf16 %v2881_v53, %v2880_v51 }
 0x31a   :  { %4568 = vmatpush3.bf16.msra.mxu0 %v4455_v57  ;;  %v3214_v57 = vld [vmem:[%s5577_s6 + $0x100] sm:$0xff] }
 0x31b   :  { %4468 = vmatpush3.bf16.msra.mxu1 %v4467_v7  ;;  %4569 = vmatprep.subr.bf16.mxu0 %v4746_v61  ;;  %v4504_v59 = vpack.c.bf16 %v3215_v58, %v3214_v57  ;;  %v2883_v57 = vld [vmem:[%s5579_s7 + $0x28] sm:$0xff] }
 0x31c   :  { %4469 = vmatprep.subr.bf16.mxu1 %v4746_v61 }
 0x31e   :  { %4571 = vmatpush3.bf16.msra.mxu0 %v4458_v62  ;;  %v3216_v62 = vld [vmem:[%s5577_s6 + $0x110] sm:$0xff] }
 0x31f   :  { %4471 = vmatpush3.bf16.msra.mxu1 %v4470_v10  ;;  %4572 = vmatprep.subr.bf16.mxu0 %v4746_v61  ;;  %v4507_v0 = vpack.c.bf16 %v3217_v63, %v3216_v62  ;;  %v2884_v63 = vld [vmem:[%s5579_s7 + $0x30] sm:$0xff] }
 0x320   :  { %4472 = vmatprep.subr.bf16.mxu1 %v4746_v61 }
 0x322   :  { %4574 = vmatpush3.bf16.msra.mxu0 %v4461_v1  ;;  %v3218_v1 = vld [vmem:[%s5577_s6 + $0x120] sm:$0xff] }
 0x323   :  { %4474 = vmatpush3.bf16.msra.mxu1 %v4473_v15  ;;  %4575 = vmatprep.subr.bf16.mxu0 %v4746_v61  ;;  %v4510_v3 = vpack.c.bf16 %v3219_v2, %v3218_v1  ;;  %v2886_v2 = vld [vmem:[%s5579_s7 + $0x40] sm:$0xff] }
 0x324   :  { %4475 = vmatprep.subr.bf16.mxu1 %v4746_v61 }
 0x326   :  { %4577 = vmatpush3.bf16.msra.mxu0 %v4464_v4  ;;  %v3220_v4 = vld [vmem:[%s5577_s6 + $0x130] sm:$0xff] }
 0x327   :  { %4578 = vmatprep.subr.bf16.mxu0 %v4746_v61  ;;  %v4513_v6 = vpack.c.bf16 %v3221_v5, %v3220_v4  ;;  %v2888_v5 = vld [vmem:[%s5579_s7 + $0x50] sm:$0xff] }
 0x32a   :  { %4580 = vmatpush3.bf16.msra.mxu0 %v4467_v7  ;;  %v3222_v7 = vld [vmem:[%s5577_s6 + $0x140] sm:$0xff] }
 0x32b   :  { %4581 = vmatprep.subr.bf16.mxu0 %v4746_v61  ;;  %v4516_v9 = vpack.c.bf16 %v3223_v8, %v3222_v7  ;;  %v2890_v8 = vld [vmem:[%s5579_s7 + $0x60] sm:$0xff] }
 0x32e   :  { %4583 = vmatpush3.bf16.msra.mxu0 %v4470_v10  ;;  %v3224_v10 = vld [vmem:[%s5577_s6 + $0x150] sm:$0xff] }
 0x32f   :  { %4584 = vmatprep.subr.bf16.mxu0 %v4746_v61  ;;  %v4519_v13 = vpack.c.bf16 %v3225_v11, %v3224_v10 }
 0x332   :  { %4586 = vmatpush3.bf16.msra.mxu0 %v4473_v15  ;;  %v3226_v15 = vld [vmem:[%s5577_s6 + $0x160] sm:$0xff] }
 0x333   :  { %4587 = vmatprep.subr.bf16.mxu0 %v4746_v61  ;;  %v4522_v17 = vpack.c.bf16 %v3227_v16, %v3226_v15 }
 0x3d8   :  { %v5249_v24 = vpop.f32.mrb[10].mxu0  ;;  %v1796_v25 = vpop.f32.mrb[14].mxu1 }
 0x3d9   :  { %v3843_v27 = vpop.f32.mrb[11].mxu0  ;;  %3884 = vmatmul.mubr.f32.vlgmr.msra.gmra.mrb[16].mxu1 %v1796_v25  ;;  %v3850_v28 = vpop.f32.mrb[15].mxu1 }
 0x3da   :  { %4477 = vmatpush3.bf16.msra.mxu1 %v4476_v18  ;;  %3918 = vmatprep.mubr.msk.f32.mxu1 %vm4747_vm4, %v4748_v22  ;;  %v3237_v27 = vld [vmem:[%s5577_s6 + $0x190] sm:$0xff]  ;;  %v3238_v28 = vld [vmem:[%s5577_s6 + $0x198] sm:$0xff] }
 0x3db   :  { %4478 = vmatprep.subr.bf16.mxu1 %v4746_v61 }
 0x3dc   :  { %v5260_v32 = vpop.f32.mrb[12].mxu0 }
 0x3dd   :  { %v3927_v33 = vpop.f32.mrb[13].mxu0 }
 0x3de   :  { %4480 = vmatpush3.bf16.msra.mxu1 %v4479_v29  ;;  %v3241_v33 = vld [vmem:[%s5577_s6 + $0x1b0] sm:$0xff] }
 0x3df   :  { %4481 = vmatprep.subr.bf16.mxu1 %v4746_v61 }
 0x3e0   :  { %v5269_v37 = vpop.f32.mrb[14].mxu0 }
 0x3e1   :  { %v3969_v23 = vpop.f32.mrb[15].mxu0 }
 0x3e2   :  { %4483 = vmatpush3.bf16.msra.mxu1 %v4482_v34  ;;  %v3244_v23 = vld [vmem:[%s5577_s6 + $0x1c8] sm:$0xff] }
 0x3e3   :  { %4484 = vmatprep.subr.bf16.mxu1 %v4746_v61 }
 0x3e4   :  { %v5278_v40 = vpop.f32.mrb[16].mxu0 }
 0x3e5   :  { %v4011_v41 = vpop.f32.mrb[17].mxu0 }
 0x3e6   :  { %4486 = vmatpush3.bf16.msra.mxu1 %v4485_v38  ;;  %v3247_v41 = vld [vmem:[%s5577_s6 + $0x1e0] sm:$0xff] }
 0x3e7   :  { %4487 = vmatprep.subr.bf16.mxu1 %v4746_v61 }
 0x3e8   :  { %v2419_v46 = vpop.f32.mrb[18].mxu0 }
 0x3e9   :  { %v4018_v47 = vpop.f32.mrb[19].mxu0  ;;  %4052 = vmatmul.mubr.f32.vlgmr.msra.gmra.mrb[20].mxu0 %v2419_v46  ;;  %v3250_v46 = vld [vmem:[%s5577_s6 + $0x1f8] sm:$0xff] }
 0x3ea   :  { %4489 = vmatpush3.bf16.msra.mxu1 %v4488_v42  ;;  %4589 = vmatpush3.bf16.msra.mxu0 %v4476_v18  ;;  %v3228_v18 = vld [vmem:[%s5577_s6 + $0x170] sm:$0xff]  ;;  %v4553_v47 = vpack.c.bf16 %v3250_v46, %v3249_v44 }
 0x3eb   :  { %4490 = vmatprep.subr.bf16.mxu1 %v4746_v61  ;;  %4590 = vmatprep.subr.bf16.mxu0 %v4746_v61 }
 0x3ec   :  { %4086 = vmatprep.mubr.msk.f32.mxu0 %vm4747_vm4, %v4748_v22 }
 0x3ee   :  { %4492 = vmatpush3.bf16.msra.mxu1 %v4491_v48  ;;  %4592 = vmatpush3.bf16.msra.mxu0 %v4479_v29  ;;  %v4535_v29 = vpack.c.bf16 %v3238_v28, %v3237_v27 }
 0x3ef   :  { %4493 = vmatprep.subr.bf16.mxu1 %v4746_v61  ;;  %4593 = vmatprep.subr.bf16.mxu0 %v4746_v61 }
 0x3f2   :  { %4495 = vmatpush3.bf16.msra.mxu1 %v4494_v52  ;;  %4595 = vmatpush3.bf16.msra.mxu0 %v4482_v34  ;;  %v3242_v34 = vld [vmem:[%s5577_s6 + $0x1b8] sm:$0xff] }
 0x3f3   :  { %4496 = vmatprep.subr.bf16.mxu1 %v4746_v61  ;;  %4596 = vmatprep.subr.bf16.mxu0 %v4746_v61  ;;  %v4541_v36 = vpack.c.bf16 %v3242_v34, %v3241_v33 }
 0x3f6   :  { %4498 = vmatpush3.bf16.msra.mxu1 %v4497_v55  ;;  %4598 = vmatpush3.bf16.msra.mxu0 %v4485_v38  ;;  %v4544_v38 = vpack.c.bf16 %v3244_v23, %v3243_v26 }
 0x3f7   :  { %4503 = vmatprep.subr.bf16.mxu1 %v4746_v61  ;;  %4599 = vmatprep.subr.bf16.mxu0 %v4746_v61 }
 0x3f9   :  { %3919 = vmatmul.mubr.f32.vlgmr.msra.gmra.mrb[16].mxu1 %v5249_v24  ;;  %v3236_v24 = vld [vmem:[%s5577_s6 + $0x188] sm:$0xff] }
 0x3fa   :  { %4505 = vmatpush3.bf16.msra.mxu1 %v4504_v59  ;;  %4601 = vmatpush3.bf16.msra.mxu0 %v4488_v42  ;;  %v4532_v25 = vpack.c.bf16 %v3236_v24, %v3235_v21  ;;  %v3248_v42 = vld [vmem:[%s5577_s6 + $0x1e8] sm:$0xff] }
 0x3fb   :  { %4506 = vmatprep.subr.bf16.mxu1 %v4746_v61  ;;  %4602 = vmatprep.subr.bf16.mxu0 %v4746_v61  ;;  %v4550_v43 = vpack.c.bf16 %v3248_v42, %v3247_v41 }
 0x3fc   :  { %3960 = vmatprep.mubr.msk.f32.mxu1 %vm4747_vm4, %v4748_v22 }
 0x3fe   :  { %4508 = vmatpush3.bf16.msra.mxu1 %v4507_v0  ;;  %4604 = vmatpush3.bf16.msra.mxu0 %v4491_v48 }
 0x3ff   :  { %4509 = vmatprep.subr.bf16.mxu1 %v4746_v61  ;;  %4605 = vmatprep.subr.bf16.mxu0 %v4746_v61 }
 0x402   :  { %4511 = vmatpush3.bf16.msra.mxu1 %v4510_v3  ;;  %4607 = vmatpush3.bf16.msra.mxu0 %v4494_v52 }
 0x403   :  { %4512 = vmatprep.subr.bf16.mxu1 %v4746_v61  ;;  %4608 = vmatprep.subr.bf16.mxu0 %v4746_v61 }
 0x406   :  { %4514 = vmatpush3.bf16.msra.mxu1 %v4513_v6  ;;  %4610 = vmatpush3.bf16.msra.mxu0 %v4497_v55  ;;  %v2882_v55 = vld [vmem:[%s5579_s7 + $0x20] sm:$0xff] }
 0x407   :  { %4515 = vmatprep.subr.bf16.mxu1 %v4746_v61  ;;  %4611 = vmatprep.subr.bf16.mxu0 %v4746_v61  ;;  %v5497_v58 = vpack.c.bf16 %v2883_v57, %v2882_v55  ;;  %v3043_v57 = vld [vmem:[%s5580_s8] sm:$0x3] }
 0x409   :  { %4087 = vmatmul.mubr.f32.vlgmr.msra.gmra.mrb[20].mxu0 %v5278_v40  ;;  %v4547_v40 = vpack.c.bf16 %v3246_v39, %v3245_v35 }
 0x40a   :  { %4517 = vmatpush3.bf16.msra.mxu1 %v4516_v9  ;;  %4614 = vmatpush3.bf16.msk.msra.mxu0 %vm5110_vm12, %v5121_v50 }
 0x40b   :  { %4093 = vmatprep.mubr.msk.f32.mxu0 %vm4747_vm4, %v4748_v22  ;;  %4518 = vmatprep.subr.bf16.mxu1 %v4746_v61 }
 0x40c   :  { %4615 = vmatprep.subr.bf16.mxu0 %v4746_v61 }
 0x40d   :  { %4094 = vmatmul.mubr.msk.f32.vlgmr.msra.gmra.mrb[22].mxu0 %vm1635_vm13, %v5150_v56  ;;  %v4525_v56 = vpack.c.bf16 %v3229_v20, %v3228_v18 }
 0x40e   :  { %4520 = vmatpush3.bf16.msra.mxu1 %v4519_v13  ;;  %4617 = vmatpush3.bf16.msra.mxu0 %v4504_v59 }
 0x40f   :  { %4521 = vmatprep.subr.bf16.mxu1 %v4746_v61  ;;  %4618 = vmatprep.subr.bf16.mxu0 %v4746_v61 }
 0x410   :  { %4128 = vmatprep.mubr.msk.f32.mxu0 %vm4747_vm4, %v4748_v22 }
 0x412   :  { %4523 = vmatpush3.bf16.msra.mxu1 %v4522_v17  ;;  %4620 = vmatpush3.bf16.msra.mxu0 %v4507_v0  ;;  %v2885_v0 = vld [vmem:[%s5579_s7 + $0x38] sm:$0xff] }
 0x413   :  { %4524 = vmatprep.subr.bf16.mxu1 %v4746_v61  ;;  %4621 = vmatprep.subr.bf16.mxu0 %v4746_v61  ;;  %v4677_v1 = vpack.c.bf16 %v2885_v0, %v2884_v63 }
 0x416   :  { %4526 = vmatpush3.bf16.msra.mxu1 %v4525_v56  ;;  %4623 = vmatpush3.bf16.msra.mxu0 %v4510_v3  ;;  %v2887_v3 = vld [vmem:[%s5579_s7 + $0x48] sm:$0xff] }
 0x417   :  { %4531 = vmatprep.subr.bf16.mxu1 %v4746_v61  ;;  %4624 = vmatprep.subr.bf16.mxu0 %v4746_v61  ;;  %v4680_v4 = vpack.c.bf16 %v2887_v3, %v2886_v2 }
 0x419   :  { %3961 = vmatmul.mubr.f32.vlgmr.msra.gmra.mrb[16].mxu1 %v5260_v32  ;;  %v4538_v32 = vpack.c.bf16 %v3240_v31, %v3239_v30 }
 0x41a   :  { %4533 = vmatpush3.bf16.msra.mxu1 %v4532_v25  ;;  %4002 = vmatprep.mubr.msk.f32.mxu1 %vm4747_vm4, %v4748_v22 }
 0x41b   :  { %4534 = vmatprep.subr.bf16.mxu1 %v4746_v61  ;;  %4626 = vmatpush3.bf16.msra.mxu0 %v4513_v6  ;;  %v2889_v6 = vld [vmem:[%s5579_s7 + $0x58] sm:$0xff] }
 0x41c   :  { %4627 = vmatprep.subr.bf16.mxu0 %v4746_v61  ;;  %v4683_v7 = vpack.c.bf16 %v2889_v6, %v2888_v5  ;;  %v3052_v6 = vld [vmem:[%s5581_s9] sm:$0x7f] }
 0x41e   :  { %4536 = vmatpush3.bf16.msra.mxu1 %v4535_v29 }
 0x41f   :  { %4537 = vmatprep.subr.bf16.mxu1 %v4746_v61  ;;  %4629 = vmatpush3.bf16.msra.mxu0 %v4516_v9  ;;  %v2891_v9 = vld [vmem:[%s5579_s7 + $0x68] sm:$0xff] }
 0x420   :  { %4630 = vmatprep.subr.bf16.mxu0 %v4746_v61  ;;  %v4686_v10 = vpack.c.bf16 %v2891_v9, %v2890_v8 }
 0x422   :  { %4539 = vmatpush3.bf16.msra.mxu1 %v4538_v32 }
 0x423   :  { %4540 = vmatprep.subr.bf16.mxu1 %v4746_v61  ;;  %4632 = vmatpush3.bf16.msra.mxu0 %v4519_v13 }
 0x424   :  { %4633 = vmatprep.subr.bf16.mxu0 %v4746_v61 }
 0x426   :  { %4542 = vmatpush3.bf16.msra.mxu1 %v4541_v36 }
 0x427   :  { %4543 = vmatprep.subr.bf16.mxu1 %v4746_v61  ;;  %4635 = vmatpush3.bf16.msra.mxu0 %v4522_v17 }
 0x428   :  { %4636 = vmatprep.subr.bf16.mxu0 %v4746_v61 }
 0x42a   :  { %4545 = vmatpush3.bf16.msra.mxu1 %v4544_v38 }
 0x42b   :  { %4546 = vmatprep.subr.bf16.mxu1 %v4746_v61  ;;  %4638 = vmatpush3.bf16.msra.mxu0 %v4525_v56 }
 0x42c   :  { %4639 = vmatprep.subr.bf16.mxu0 %v4746_v61 }
 0x42e   :  { %4548 = vmatpush3.bf16.msra.mxu1 %v4547_v40 }
 0x42f   :  { %4549 = vmatprep.subr.bf16.mxu1 %v4746_v61 }
 0x432   :  { %4551 = vmatpush3.bf16.msra.mxu1 %v4550_v43 }
 0x433   :  { %4552 = vmatprep.subr.bf16.mxu1 %v4746_v61 }
 0x436   :  { %4554 = vmatpush3.bf16.msra.mxu1 %v4553_v47 }
 0x437   :  { %4667 = vmatprep.subr.bf16.mxu1 %v4746_v61 }
 0x439   :  { %4003 = vmatmul.mubr.f32.vlgmr.msra.gmra.mrb[16].mxu1 %v5269_v37  ;;  %v2879_v37 = vld [vmem:[%s5579_s7 + $0x8] sm:$0xff] }
 0x43a   :  { %4201 = vmatprep.mubr.msk.f32.mxu1 %vm4747_vm4, %v4748_v22 }
 0x4e0   :  { %v2629_v48 = vpop.f32.mrb[22].mxu0 }
 0x4e1   :  { %v4095_v49 = vpop.f32.mrb[23].mxu0  ;;  %4129 = vmatmul.mubr.f32.vlgmr.msra.gmra.mrb[20].mxu0 %v2629_v48 }
 0x4e2   :  { %4642 = vmatpush3.bf16.msk.msra.mxu0 %vm5110_vm12, %v5121_v50  ;;  %4135 = vmatprep.mubr.msk.f32.mxu0 %vm4747_vm4, %v4748_v22 }
 0x4e3   :  { %4643 = vmatprep.subr.bf16.mxu0 %v4746_v61 }
 0x4e5   :  { %4136 = vmatmul.mubr.msk.f32.vlgmr.msra.gmra.mrb[24].mxu0 %vm1635_vm13, %v5171_v60  ;;  %v2878_v60 = vld [vmem:[%s5579_s7] sm:$0xff] }
 0x4e6   :  { %4645 = vmatpush3.bf16.msra.mxu0 %v4532_v25  ;;  %4170 = vmatprep.mubr.msk.f32.mxu0 %vm4747_vm4, %v4748_v22  ;;  %v5481_v52 = vpack.c.bf16 %v2879_v37, %v2878_v60 }
 0x4e7   :  { %4646 = vmatprep.subr.bf16.mxu0 %v4746_v61 }
 0x4e8   :  { %4669 = vmatpush3.bf16.msra.mxu1 %v5481_v52 }
 0x4e9   :  { %4670 = vmatprep.subr.bf16.mxu1 %v4746_v61 }
 0x4ea   :  { %4648 = vmatpush3.bf16.msra.mxu0 %v4535_v29 }
 0x4eb   :  { %4649 = vmatprep.subr.bf16.mxu0 %v4746_v61 }
 0x4ec   :  { %4672 = vmatpush3.bf16.msra.mxu1 %v5487_v54 }
 0x4ed   :  { %4673 = vmatprep.subr.bf16.mxu1 %v4746_v61 }
 0x4ee   :  { %4651 = vmatpush3.bf16.msra.mxu0 %v4538_v32 }
 0x4ef   :  { %4652 = vmatprep.subr.bf16.mxu0 %v4746_v61 }
 0x4f0   :  { %4675 = vmatpush3.bf16.msra.mxu1 %v5497_v58 }
 0x4f1   :  { %4676 = vmatprep.subr.bf16.mxu1 %v4746_v61 }
 0x4f2   :  { %4654 = vmatpush3.bf16.msra.mxu0 %v4541_v36 }
 0x4f3   :  { %4655 = vmatprep.subr.bf16.mxu0 %v4746_v61 }
 0x4f4   :  { %4678 = vmatpush3.bf16.msra.mxu1 %v4677_v1 }
 0x4f5   :  { %4679 = vmatprep.subr.bf16.mxu1 %v4746_v61 }
 0x4f6   :  { %4657 = vmatpush3.bf16.msra.mxu0 %v4544_v38 }
 0x4f7   :  { %4658 = vmatprep.subr.bf16.mxu0 %v4746_v61 }
 0x4f8   :  { %4681 = vmatpush3.bf16.msra.mxu1 %v4680_v4 }
 0x4f9   :  { %4682 = vmatprep.subr.bf16.mxu1 %v4746_v61 }
 0x4fa   :  { %4660 = vmatpush3.bf16.msra.mxu0 %v4547_v40 }
 0x4fb   :  { %4661 = vmatprep.subr.bf16.mxu0 %v4746_v61 }
 0x4fc   :  { %4684 = vmatpush3.bf16.msra.mxu1 %v4683_v7 }
 0x4fd   :  { %4685 = vmatprep.subr.bf16.mxu1 %v4746_v61 }
 0x4fe   :  { %4663 = vmatpush3.bf16.msra.mxu0 %v4550_v43 }
 0x4ff   :  { %4664 = vmatprep.subr.bf16.mxu0 %v4746_v61 }
 0x500   :  { %4687 = vmatpush3.bf16.msra.mxu1 %v4686_v10 }
 0x501   :  { %4688 = vmatprep.subr.bf16.mxu1 %v4746_v61 }
 0x502   :  { %4666 = vmatpush3.bf16.msra.mxu0 %v4553_v47 }
 0x50c   :  { %v5470_v45 = vpop.f32.mrb[16].mxu1 }
 0x50d   :  { %v4004_v50 = vpop.f32.mrb[17].mxu1  ;;  %v2853_v11 = vmul.f32 %v5470_v45, %v5470_v45  ;;  %v2846_v13 = vsel %vm2845_vm14, %v5470_v45, 0.0 }
 0x50e   :  { %v2847_v16 = vrot.slane %v2846_v13, 4 }
 0x50f   :  { %v2854_v15 = vsel %vm2845_vm14, %v2853_v11, 0.0 }
 0x510   :  { %v2855_v17 = vrot.slane %v2854_v15, 4  ;;  %v2848_v18 = vadd.f32 %v2847_v16, %v2846_v13 }
 0x512   :  { %v2856_v20 = vadd.f32 %v2855_v17, %v2854_v15  ;;  %v2849_v56 = vrot.slane %v2848_v18, 2 }
 0x514   :  { %v2857_v28 = vrot.slane %v2856_v20, 2  ;;  %v2850_v31 = vadd.f32 %v2849_v56, %v2848_v18 }
 0x516   :  { %v2858_v34 = vadd.f32 %v2857_v28, %v2856_v20  ;;  %v2851_v23 = vrot.slane %v2850_v31, 1 }
 0x518   :  { %v2859_v39 = vrot.slane %v2858_v34, 1  ;;  %v2852_v42 = vadd.f32 %v2851_v23, %v2850_v31 }
 0x51a   :  { %v2860_v46 = vadd.f32 %v2859_v39, %v2858_v34 }
 0x5b8   :  { %v2770_v59 = vpop.f32.mrb[24].mxu0 }
 0x5b9   :  { %v4137_v62 = vpop.f32.mrb[25].mxu0  ;;  %4171 = vmatmul.mubr.f32.vlgmr.msra.gmra.mrb[20].mxu0 %v2770_v59 }
 0x68c   :  { %v2840_v21 = vpop.f32.mrb[20].mxu0 }
 0x68d   :  { %v2861_v24 = vsel %vm2845_vm14, %v2840_v21, 0.0  ;;  %v2868_v25 = vmul.f32 %v2840_v21, %v2840_v21  ;;  %v4172_v27 = vpop.f32.mrb[21].mxu0 }
 0x68e   :  { %v2862_v29 = vrot.slane %v2861_v24, 4 }
 0x68f   :  { %v2869_v30 = vsel %vm2845_vm14, %v2868_v25, 0.0 }
 0x690   :  { %v2863_v32 = vadd.f32 %v2862_v29, %v2861_v24  ;;  %v2870_v33 = vrot.slane %v2869_v30, 4 }
 0x692   :  { %v2864_v36 = vrot.slane %v2863_v32, 2  ;;  %v2871_v26 = vadd.f32 %v2870_v33, %v2869_v30 }
 0x694   :  { %v2865_v38 = vadd.f32 %v2864_v36, %v2863_v32  ;;  %v2872_v35 = vrot.slane %v2871_v26, 2 }
 0x696   :  { %v2866_v40 = vrot.slane %v2865_v38, 1  ;;  %v2873_v41 = vadd.f32 %v2872_v35, %v2871_v26 }
 0x698   :  { %v2867_v43 = vadd.f32 %v2866_v40, %v2865_v38  ;;  %v2874_v44 = vrot.slane %v2873_v41, 1 }
 0x69a   :  { %v2875_v47 = vadd.f32 %v2874_v44, %v2873_v41  ;;  %v2876_v48 = vadd.f32 %v2867_v43, %v2852_v42 }
 0x69c   :  { %4202 = vmatmul.mubr.msk.f32.vlgmr.msra.gmra.mrb[18].mxu1 %vm2892_vm15, %v2876_v48  ;;  %v2877_v49 = vadd.f32 %v2875_v47, %v2860_v46 }
 0x69d   :  { %4690 = vmatpush3.bf16.msra.mxu1 %v5481_v52  ;;  %4232 = vmatprep.mubr.msk.f32.mxu1 %vm4747_vm4, %v4748_v22 }
 0x69e   :  { %4691 = vmatprep.subr.bf16.mxu1 %v4746_v61 }
 0x6a1   :  { %4693 = vmatpush3.bf16.msra.mxu1 %v5487_v54 }
 0x6a2   :  { %4694 = vmatprep.subr.bf16.mxu1 %v4746_v61 }
 0x6a5   :  { %4696 = vmatpush3.bf16.msra.mxu1 %v5497_v58 }
 0x6a6   :  { %4697 = vmatprep.subr.bf16.mxu1 %v4746_v61 }
 0x6a9   :  { %4699 = vmatpush3.bf16.msra.mxu1 %v4677_v1 }
 0x6aa   :  { %4700 = vmatprep.subr.bf16.mxu1 %v4746_v61 }
 0x6ad   :  { %4702 = vmatpush3.bf16.msra.mxu1 %v4680_v4 }
 0x6ae   :  { %4703 = vmatprep.subr.bf16.mxu1 %v4746_v61 }
 0x6b1   :  { %4705 = vmatpush3.bf16.msra.mxu1 %v4683_v7 }
 0x6b2   :  { %4706 = vmatprep.subr.bf16.mxu1 %v4746_v61 }
 0x6b5   :  { %4708 = vmatpush3.bf16.msra.mxu1 %v4686_v10 }
 0x6b8   :  { %4233 = vmatmul.mubr.msk.f32.vlgmr.msra.gmra.mrb[20].mxu1 %vm2892_vm15, %v2877_v49 }
 0x76f   :  { %v2962_v22 = vpop.f32.mrb[18].mxu1 }
 0x770   :  { %v4203_v50 = vpop.f32.mrb[19].mxu1  ;;  %v2966_v60 = vmul.f32 0.010204081, %v2962_v22 }
 0x772   :  { %v3041_v51 = vmul.f32 %v2966_v60, %v2966_v60 }
 0x78b   :  { %v3036_v37 = vpop.f32.mrb[20].mxu1 }
 0x78c   :  { %v3040_v52 = vmul.f32 0.010204081, %v3036_v37  ;;  %v4234_v53 = vpop.f32.mrb[21].mxu1 }
 0x78e   :  { %v3042_v54 = vsub.f32 %v3040_v52, %v3041_v51 }
 0x790   :  { %v3044_v55 = vadd.f32 1e-05, %v3042_v54 }
 0x792   :  { %4739 = vrsqrt.f32 %v3044_v55 }
 0x79c   :  { %v4740_v58 = vpop.eup %4739 }
 0x79d   :  { %v3046_v59 = vmul.f32 %v4740_v58, %v3043_v57 }
 0x79f   :  { %v3047_v61 = vmul.f32 %v3046_v59, %v2966_v60  ;;  %v3056_v62 = vrot.slane %v3046_v59, %v1588_v14 }
 0x7a1   :  { %v3049_v63 = vrot.slane %v3047_v61, 7  ;;  %v3057_v0 = vmul.f32 %v3056_v62, %v5470_v45  ;;  %v3077_v1 = vmul.f32 %v3056_v62, %v2840_v21 }
 0x7a3   :  { %v3051_v2 = vsub.f32 %v3043_v57, %v3049_v63 }
 0x7a5   :  { %v3061_v3 = vrot.slane %v3051_v2, %v1594_v19  ;;  %v16_v19 = vstv %s5582_s10 }
 0x7a6   :  { %17 = vst [vmem:[#allocation2] sm:$0x1] %v16_v19 }
 0x7a7   :  { %v3062_v4 = vadd.f32 %v3061_v3, %v3057_v0  ;;  %v3078_v5 = vadd.f32 %v3077_v1, %v3061_v3 }
 0x7a9   :  { %vm3063_vm0 = vcmp.ge.f32.partialorder %v3062_v4, 0.0  ;;  %v3064_v7 = vmul.f32 0.2, %v3062_v4  ;;  %vm3079_vm1 = vcmp.ge.f32.partialorder %v3078_v5, 0.0  ;;  %v3080_v8 = vmul.f32 0.2, %v3078_v5 }
 0x7ab   :  { %v3065_v9 = vsel %vm3063_vm0, %v3062_v4, %v3064_v7  ;;  %v3081_v14 = vsel %vm3079_vm1, %v3078_v5, %v3080_v8 }
 0x7ac   :  { %v3066_v10 = vmul.f32 %v3065_v9, %v3052_v6  ;;  %v3082_v11 = vmul.f32 %v3081_v14, %v3052_v6 }
 0x7ad   :  { %v3269_v32 = vld [vmem:[#allocation2] ss:$0 sm:$0xff] }
 0x7ae   :  { %v3067_v45 = vsel %vm2845_vm14, %v3066_v10, 0.0  ;;  %v3083_v12 = vsel %vm2845_vm14, %v3082_v11, 0.0 }
 0x7af   :  { %3068 = vadd.xlane.f32.xlu0 %v3067_v45 }
 0x7b3   :  { %3084 = vadd.xlane.f32.xlu0 %v3083_v12 }
 0x83c   :  { %v3069_v13 = vpop.xlane.xlu0 %3068 }
 0x83d   :  { %v3070_v15 = vsel %vm1613_vm10, %v3069_v13, 0.0 }
 0x83e   :  { %v3071_v16 = vrot.slane %v3070_v15, 4 }
 0x840   :  { %v3072_v17 = vadd.f32 %v3071_v16, %v3070_v15  ;;  %v3085_v18 = vpop.xlane.xlu0 %3084 }
 0x841   :  { %v3086_v20 = vsel %vm1613_vm10, %v3085_v18, 0.0 }
 0x842   :  { %v3073_v56 = vrot.slane %v3072_v17, 2  ;;  %v3087_v21 = vrot.slane %v3086_v20, 4 }
 0x844   :  { %v3074_v24 = vadd.f32 %v3073_v56, %v3072_v17  ;;  %v3088_v25 = vadd.f32 %v3087_v21, %v3086_v20 }
 0x846   :  { %v3089_v27 = vrot.slane %v3088_v25, 2  ;;  %v3075_v28 = vrot.slane %v3074_v24, 1 }
 0x848   :  { %v3090_v29 = vadd.f32 %v3089_v27, %v3088_v25  ;;  %v3076_v31 = vadd.f32 %v3075_v28, %v3074_v24 }
 0x84a   :  { %v3091_v30 = vrot.slane %v3090_v29, 1 }
 0x84c   :  { %v3092_v33 = vadd.f32 %v3091_v30, %v3090_v29 }
 0x84e   :  { %v3093_v34 = vsel %vm1606_vm5, %v3076_v31, %v3092_v33 }
 0x84f   :  { %v3101_v36 = vadd.f32 %v3269_v32, %v3093_v34 }
 0x851   :  { %v3270_v26 = vmul.f32 -1.442695, %v3101_v36 }
 0x853   :  { %4741 = vpow2.f32 %v3270_v26 }
 0x85d   :  { %v4742_v23 = vpop.eup %4741 }
 0x85e   :  { %v3105_v38 = vadd.f32 1.0, %v4742_v23 }
 0x860   :  { %4743 = vrcp.f32 %v3105_v38 }
 0x86a   :  { %v4744_v35 = vpop.eup %4743 }
 0x86b   :  { %3109 = vst.msk [vmem:[%s5583_s11] sm:$0x3] %vm3108_vm2, %v4744_v35 }

</bundles_post_ra>
